<compile_context>
chip_gen: v5e
topology: v5e:2x2
jax: 0.10.0
libtpu: 0.0.40
codegen_flags: <defaults>
</compile_context>

<pallas_src>
import functools

import jax
import jax.numpy as jnp
from jax.experimental import pallas as pl
from jax.experimental.pallas import tpu as pltpu


# ----------------------------- in-kernel helpers -----------------------------

def _mm(a, w):
    # a @ w with bf16 (or w.dtype) operands and f32 accumulation on the MXU.
    return jax.lax.dot_general(a.astype(w.dtype), w, (((1,), (0,)), ((), ())),
                               preferred_element_type=jnp.float32)


def _layernorm(x, gamma, beta, eps=1e-5):
    mu = jnp.mean(x, axis=-1, keepdims=True)
    var = jnp.mean((x - mu) ** 2, axis=-1, keepdims=True)
    return (x - mu) * jax.lax.rsqrt(var + eps) * gamma + beta


# ----------------------------- fused encoder kernel -----------------------------

def encoder_kernel(x_ref, wqkv_ref, wu_ref, w1_ref, w2_ref, vecs_ref,
                   wo_ref, bo_ref, o_ref, *, b, t, k, h, depth):
    hk = h * k
    x = x_ref[...]                                            # (b*t, k) f32, stays in vregs

    for dd in range(depth):                                   # depth unrolled (tiny, static)
        # packed per-layer vector slab: rows = [bu, g1, beta1, b1(4k), b2, g2, beta2, pad]
        vl = vecs_ref[dd]                                     # (8, 128) f32
        bu, g1, beta1 = vl[0:1, 0:k], vl[1:2, 0:k], vl[2:3, 0:k]
        b1 = vl[3:4, 0:4 * k]
        b2, g2, beta2 = vl[4:5, 0:k], vl[5:6, 0:k], vl[6:7, 0:k]

        # ---------------- fused QKV projection (scale folded into Wq/Wk at init) ----------------
        qkv = _mm(x, wqkv_ref[dd])                            # (b*t, 3*h*k) f32
        q  = qkv[:, 0:hk].astype(jnp.bfloat16)                # (b*t, h*k), head hi = cols hi*k:(hi+1)*k
        ky = qkv[:, hk:2 * hk].astype(jnp.bfloat16)
        v  = qkv[:, 2 * hk:3 * hk].astype(jnp.bfloat16)

        # group per (batch, head): g = bi*h + hi (matches torch's (b*h, t, k) view ordering)
        def groups(m):
            return jnp.concatenate(
                [m[bi * t:(bi + 1) * t, hi * k:(hi + 1) * k][None]
                 for bi in range(b) for hi in range(h)], axis=0)           # (b*h, t, k)

        q_g, k_g, v_g = groups(q), groups(ky), groups(v)

        dots = jnp.einsum('gqd,gsd->gqs', q_g, k_g,
                          preferred_element_type=jnp.float32)              # (b*h, t, t)

        # F.softmax(dot) with PyTorch's legacy implicit dim -> softmax over the b*h axis (axis 0).
        m_ = jnp.max(dots, axis=0, keepdims=True)
        e = jnp.exp(dots - m_)
        denom = jnp.sum(e, axis=0, keepdims=True)
        attn = e * pl.reciprocal(denom, approx=True)          # set approx=False for bit parity

        out_g = jnp.einsum('gqs,gsd->gqd', attn.astype(jnp.bfloat16), v_g,
                           preferred_element_type=jnp.float32)             # (b*h, t, k)

        # out.transpose(1,2).view(b, t, h*k): heads back into lanes -> (b*t, h*k)
        attended_in = jnp.concatenate(
            [jnp.concatenate([out_g[bi * h + hi] for hi in range(h)], axis=1)
             for bi in range(b)], axis=0)                                  # (b*t, h*k)

        # unify heads: ONE (b*t, h*k) @ (h*k, k) matmul
        attended = _mm(attended_in, wu_ref[dd]) + bu                       # (b*t, k)

        # ---------------- residual + LN1, feed-forward, residual + LN2 ----------------
        y = _layernorm(attended + x, g1, beta1)
        hidden = jnp.maximum(_mm(y, w1_ref[dd]) + b1, 0.0)                 # (b*t, 4k)
        ff = _mm(hidden, w2_ref[dd]) + b2                                  # (b*t, k)
        x = _layernorm(ff + y, g2, beta2)

    # ---------------- classification head (mean over seq -> linear -> log_softmax) ----------------
    xm = jnp.mean(x.reshape(b, t, k), axis=1)                              # (b, k)
    logits = jax.lax.dot_general(xm, wo_ref[...], (((1,), (0,)), ((), ())),
                                 preferred_element_type=jnp.float32) + bo_ref[...]
    mx = jnp.max(logits, axis=1, keepdims=True)
    sh = logits - mx
    lse = jnp.log(jnp.sum(jnp.exp(sh), axis=1, keepdims=True))
    o_ref[...] = sh - lse                                                  # log_softmax(dim=1)


# ----------------------------- pallas_call wrapper -----------------------------

def transformer_encoder(tokens, params, *, k, heads):
    b, t = tokens.shape
    depth = params["wqkv"].shape[0]
    num_classes = params["w_out"].shape[1]

    # TODO(synk): token/positional embedding gather (data-dependent nn.Embedding lookup) stays in
    # plain JAX glue outside the kernel.
    emb = jnp.take(params["token_emb"], tokens, axis=0)        # (b, t, k)
    pos = params["pos_emb"][None, :t, :]                       # (1, t, k)
    x = (emb + pos).astype(jnp.float32).reshape(b * t, k)      # (b*t, k)

    ins = (x, params["wqkv"], params["wu"], params["w1"], params["w2"],
           params["vecs"], params["w_out"], params["b_out"])

    return pl.pallas_call(
        functools.partial(encoder_kernel, b=b, t=t, k=k, h=heads, depth=depth),
        out_shape=jax.ShapeDtypeStruct((b, num_classes), jnp.float32),
        in_specs=[pl.BlockSpec(memory_space=pltpu.MemorySpace.VMEM)] * len(ins),
        out_specs=pl.BlockSpec(memory_space=pltpu.MemorySpace.VMEM),
    )(*ins)


# ----------------------------- parameters -----------------------------

def init_params(key, *, k, heads, depth, seq_length, vocab_size, num_classes):
    keys = jax.random.split(key, 3 + depth)
    scale = 1.0 / (k ** 0.25)                  # folded into Wq and Wk (no bias on those linears)
    vec_w = max(128, 4 * k)

    def normal(kk_, shape, s=0.05):
        return (s * jax.random.normal(kk_, shape)).astype(jnp.float32)

    wqkv, wu, w1, w2, vecs = [], [], [], [], []
    for dd in range(depth):
        bk = jax.random.split(keys[3 + dd], 6)
        wq = normal(bk[0], (k, k * heads)) * scale     # head hi = output cols hi*k:(hi+1)*k
        wk = normal(bk[1], (k, k * heads)) * scale
        wv = normal(bk[2], (k, k * heads))
        wqkv.append(jnp.concatenate([wq, wk, wv], axis=1).astype(jnp.bfloat16))   # (k, 3*h*k)
        wu.append(normal(bk[3], (heads * k, k)).astype(jnp.bfloat16))             # (h*k, k)
        w1.append(normal(bk[4], (k, 4 * k)).astype(jnp.bfloat16))
        w2.append(normal(bk[5], (4 * k, k)).astype(jnp.bfloat16))

        slab = jnp.zeros((8, vec_w), jnp.float32)
        # rows: 0=bu (zeros), 1=gamma1 (ones), 2=beta1 (zeros), 3=b1 (zeros),
        #       4=b2 (zeros), 5=gamma2 (ones), 6=beta2 (zeros), 7=pad
        slab = slab.at[1, :k].set(1.0)
        slab = slab.at[5, :k].set(1.0)
        vecs.append(slab)

    return {
        "token_emb": normal(keys[0], (vocab_size, k), 1.0),
        "pos_emb": normal(keys[1], (seq_length, k), 1.0),
        "w_out": normal(keys[2], (k, num_classes)),
        "b_out": jnp.zeros((1, num_classes), jnp.float32),
        "wqkv": jnp.stack(wqkv),
        "wu": jnp.stack(wu),
        "w1": jnp.stack(w1),
        "w2": jnp.stack(w2),
        "vecs": jnp.stack(vecs),
    }


# ----------------------------- main -----------------------------

if __name__ == "__main__":
    K, HEADS, DEPTH = 32, 4, 2
    SEQ_LEN, VOCAB, NUM_CLASSES = 8, 100, 10
    BATCH = 2

    key = jax.random.PRNGKey(0)
    kp, kt = jax.random.split(key)
    params = init_params(kp, k=K, heads=HEADS, depth=DEPTH,
                         seq_length=SEQ_LEN, vocab_size=VOCAB, num_classes=NUM_CLASSES)
    tokens = jax.random.randint(kt, (BATCH, SEQ_LEN), 0, VOCAB, dtype=jnp.int32)

    out = transformer_encoder(tokens, params, k=K, heads=HEADS)
    out = jax.block_until_ready(out)
    assert out.shape == (BATCH, NUM_CLASSES)
    assert bool(jnp.all(jnp.isfinite(out)))
    print("KERNEL_OK")
</pallas_src>

<mosaic_0001>
module attributes {stable_mosaic.version = 11 : i64} {
  func.func @encoder_kernel(%arg0: memref<16x32xf32, #tpu.memory_space<vmem>>, %arg1: memref<2x32x384xbf16, #tpu.memory_space<vmem>>, %arg2: memref<2x128x32xbf16, #tpu.memory_space<vmem>>, %arg3: memref<2x32x128xbf16, #tpu.memory_space<vmem>>, %arg4: memref<2x128x32xbf16, #tpu.memory_space<vmem>>, %arg5: memref<2x8x128xf32, #tpu.memory_space<vmem>>, %arg6: memref<32x10xf32, #tpu.memory_space<vmem>>, %arg7: memref<1x10xf32, #tpu.memory_space<vmem>>, %arg8: memref<2x10xf32, #tpu.memory_space<vmem>>) attributes {dimension_semantics = [], scalar_prefetch = 0 : i64, scratch_operands = 0 : i64, tpu.core_type = #tpu.core_type<tc>} {
    %c0 = arith.constant 0 : index
    %c0_0 = arith.constant 0 : index
    %0 = vector.load %arg0[%c0, %c0_0] : memref<16x32xf32, #tpu.memory_space<vmem>>, vector<16x32xf32>
    %c0_1 = arith.constant 0 : index
    %c0_2 = arith.constant 0 : index
    %c0_3 = arith.constant 0 : index
    %1 = vector.load %arg5[%c0_1, %c0_2, %c0_3] : memref<2x8x128xf32, #tpu.memory_space<vmem>>, vector<1x8x128xf32>
    %2 = vector.shape_cast %1 : vector<1x8x128xf32> to vector<8x128xf32>
    %3 = vector.extract_strided_slice %2 {offsets = [0, 0], sizes = [1, 32], strides = [1, 1]} : vector<8x128xf32> to vector<1x32xf32>
    %4 = vector.extract_strided_slice %2 {offsets = [1, 0], sizes = [1, 32], strides = [1, 1]} : vector<8x128xf32> to vector<1x32xf32>
    %5 = vector.extract_strided_slice %2 {offsets = [2, 0], sizes = [1, 32], strides = [1, 1]} : vector<8x128xf32> to vector<1x32xf32>
    %6 = vector.extract_strided_slice %2 {offsets = [3, 0], sizes = [1, 128], strides = [1, 1]} : vector<8x128xf32> to vector<1x128xf32>
    %7 = vector.extract_strided_slice %2 {offsets = [4, 0], sizes = [1, 32], strides = [1, 1]} : vector<8x128xf32> to vector<1x32xf32>
    %8 = vector.extract_strided_slice %2 {offsets = [5, 0], sizes = [1, 32], strides = [1, 1]} : vector<8x128xf32> to vector<1x32xf32>
    %9 = vector.extract_strided_slice %2 {offsets = [6, 0], sizes = [1, 32], strides = [1, 1]} : vector<8x128xf32> to vector<1x32xf32>
    %c0_4 = arith.constant 0 : index
    %c0_5 = arith.constant 0 : index
    %c0_6 = arith.constant 0 : index
    %10 = vector.load %arg1[%c0_4, %c0_5, %c0_6] : memref<2x32x384xbf16, #tpu.memory_space<vmem>>, vector<1x32x384xbf16>
    %11 = vector.shape_cast %10 : vector<1x32x384xbf16> to vector<32x384xbf16>
    %12 = arith.truncf %0 : vector<16x32xf32> to vector<16x32xbf16>
    %cst = arith.constant dense<0.000000e+00> : vector<16x384xf32>
    %13 = tpu.matmul %12, %11, %cst {dimension_numbers = #tpu.dot_dimension_numbers<[1], [0], [0], [1], [0, 0, 1, 1], [], []>} : vector<16x32xbf16>, vector<32x384xbf16>, vector<16x384xf32> -> vector<16x384xf32>
    %14 = vector.extract_strided_slice %13 {offsets = [0, 0], sizes = [16, 128], strides = [1, 1]} : vector<16x384xf32> to vector<16x128xf32>
    %15 = arith.truncf %14 : vector<16x128xf32> to vector<16x128xbf16>
    %16 = vector.extract_strided_slice %13 {offsets = [0, 128], sizes = [16, 128], strides = [1, 1]} : vector<16x384xf32> to vector<16x128xf32>
    %17 = arith.truncf %16 : vector<16x128xf32> to vector<16x128xbf16>
    %18 = vector.extract_strided_slice %13 {offsets = [0, 256], sizes = [16, 128], strides = [1, 1]} : vector<16x384xf32> to vector<16x128xf32>
    %19 = arith.truncf %18 : vector<16x128xf32> to vector<16x128xbf16>
    %20 = vector.extract_strided_slice %15 {offsets = [0, 0], sizes = [8, 32], strides = [1, 1]} : vector<16x128xbf16> to vector<8x32xbf16>
    %21 = vector.shape_cast %20 : vector<8x32xbf16> to vector<1x8x32xbf16>
    %22 = vector.extract_strided_slice %15 {offsets = [0, 32], sizes = [8, 32], strides = [1, 1]} : vector<16x128xbf16> to vector<8x32xbf16>
    %23 = vector.shape_cast %22 : vector<8x32xbf16> to vector<1x8x32xbf16>
    %24 = vector.extract_strided_slice %15 {offsets = [0, 64], sizes = [8, 32], strides = [1, 1]} : vector<16x128xbf16> to vector<8x32xbf16>
    %25 = vector.shape_cast %24 : vector<8x32xbf16> to vector<1x8x32xbf16>
    %26 = vector.extract_strided_slice %15 {offsets = [0, 96], sizes = [8, 32], strides = [1, 1]} : vector<16x128xbf16> to vector<8x32xbf16>
    %27 = vector.shape_cast %26 : vector<8x32xbf16> to vector<1x8x32xbf16>
    %28 = vector.extract_strided_slice %15 {offsets = [8, 0], sizes = [8, 32], strides = [1, 1]} : vector<16x128xbf16> to vector<8x32xbf16>
    %29 = vector.shape_cast %28 : vector<8x32xbf16> to vector<1x8x32xbf16>
    %30 = vector.extract_strided_slice %15 {offsets = [8, 32], sizes = [8, 32], strides = [1, 1]} : vector<16x128xbf16> to vector<8x32xbf16>
    %31 = vector.shape_cast %30 : vector<8x32xbf16> to vector<1x8x32xbf16>
    %32 = vector.extract_strided_slice %15 {offsets = [8, 64], sizes = [8, 32], strides = [1, 1]} : vector<16x128xbf16> to vector<8x32xbf16>
    %33 = vector.shape_cast %32 : vector<8x32xbf16> to vector<1x8x32xbf16>
    %34 = vector.extract_strided_slice %15 {offsets = [8, 96], sizes = [8, 32], strides = [1, 1]} : vector<16x128xbf16> to vector<8x32xbf16>
    %35 = vector.shape_cast %34 : vector<8x32xbf16> to vector<1x8x32xbf16>
    %36 = tpu.concatenate %21, %23, %25, %27, %29, %31, %33, %35 in 0 : vector<1x8x32xbf16>, vector<1x8x32xbf16>, vector<1x8x32xbf16>, vector<1x8x32xbf16>, vector<1x8x32xbf16>, vector<1x8x32xbf16>, vector<1x8x32xbf16>, vector<1x8x32xbf16> -> vector<8x8x32xbf16>
    %37 = vector.extract_strided_slice %17 {offsets = [0, 0], sizes = [8, 32], strides = [1, 1]} : vector<16x128xbf16> to vector<8x32xbf16>
    %38 = vector.shape_cast %37 : vector<8x32xbf16> to vector<1x8x32xbf16>
    %39 = vector.extract_strided_slice %17 {offsets = [0, 32], sizes = [8, 32], strides = [1, 1]} : vector<16x128xbf16> to vector<8x32xbf16>
    %40 = vector.shape_cast %39 : vector<8x32xbf16> to vector<1x8x32xbf16>
    %41 = vector.extract_strided_slice %17 {offsets = [0, 64], sizes = [8, 32], strides = [1, 1]} : vector<16x128xbf16> to vector<8x32xbf16>
    %42 = vector.shape_cast %41 : vector<8x32xbf16> to vector<1x8x32xbf16>
    %43 = vector.extract_strided_slice %17 {offsets = [0, 96], sizes = [8, 32], strides = [1, 1]} : vector<16x128xbf16> to vector<8x32xbf16>
    %44 = vector.shape_cast %43 : vector<8x32xbf16> to vector<1x8x32xbf16>
    %45 = vector.extract_strided_slice %17 {offsets = [8, 0], sizes = [8, 32], strides = [1, 1]} : vector<16x128xbf16> to vector<8x32xbf16>
    %46 = vector.shape_cast %45 : vector<8x32xbf16> to vector<1x8x32xbf16>
    %47 = vector.extract_strided_slice %17 {offsets = [8, 32], sizes = [8, 32], strides = [1, 1]} : vector<16x128xbf16> to vector<8x32xbf16>
    %48 = vector.shape_cast %47 : vector<8x32xbf16> to vector<1x8x32xbf16>
    %49 = vector.extract_strided_slice %17 {offsets = [8, 64], sizes = [8, 32], strides = [1, 1]} : vector<16x128xbf16> to vector<8x32xbf16>
    %50 = vector.shape_cast %49 : vector<8x32xbf16> to vector<1x8x32xbf16>
    %51 = vector.extract_strided_slice %17 {offsets = [8, 96], sizes = [8, 32], strides = [1, 1]} : vector<16x128xbf16> to vector<8x32xbf16>
    %52 = vector.shape_cast %51 : vector<8x32xbf16> to vector<1x8x32xbf16>
    %53 = tpu.concatenate %38, %40, %42, %44, %46, %48, %50, %52 in 0 : vector<1x8x32xbf16>, vector<1x8x32xbf16>, vector<1x8x32xbf16>, vector<1x8x32xbf16>, vector<1x8x32xbf16>, vector<1x8x32xbf16>, vector<1x8x32xbf16>, vector<1x8x32xbf16> -> vector<8x8x32xbf16>
    %54 = vector.extract_strided_slice %19 {offsets = [0, 0], sizes = [8, 32], strides = [1, 1]} : vector<16x128xbf16> to vector<8x32xbf16>
    %55 = vector.shape_cast %54 : vector<8x32xbf16> to vector<1x8x32xbf16>
    %56 = vector.extract_strided_slice %19 {offsets = [0, 32], sizes = [8, 32], strides = [1, 1]} : vector<16x128xbf16> to vector<8x32xbf16>
    %57 = vector.shape_cast %56 : vector<8x32xbf16> to vector<1x8x32xbf16>
    %58 = vector.extract_strided_slice %19 {offsets = [0, 64], sizes = [8, 32], strides = [1, 1]} : vector<16x128xbf16> to vector<8x32xbf16>
    %59 = vector.shape_cast %58 : vector<8x32xbf16> to vector<1x8x32xbf16>
    %60 = vector.extract_strided_slice %19 {offsets = [0, 96], sizes = [8, 32], strides = [1, 1]} : vector<16x128xbf16> to vector<8x32xbf16>
    %61 = vector.shape_cast %60 : vector<8x32xbf16> to vector<1x8x32xbf16>
    %62 = vector.extract_strided_slice %19 {offsets = [8, 0], sizes = [8, 32], strides = [1, 1]} : vector<16x128xbf16> to vector<8x32xbf16>
    %63 = vector.shape_cast %62 : vector<8x32xbf16> to vector<1x8x32xbf16>
    %64 = vector.extract_strided_slice %19 {offsets = [8, 32], sizes = [8, 32], strides = [1, 1]} : vector<16x128xbf16> to vector<8x32xbf16>
    %65 = vector.shape_cast %64 : vector<8x32xbf16> to vector<1x8x32xbf16>
    %66 = vector.extract_strided_slice %19 {offsets = [8, 64], sizes = [8, 32], strides = [1, 1]} : vector<16x128xbf16> to vector<8x32xbf16>
    %67 = vector.shape_cast %66 : vector<8x32xbf16> to vector<1x8x32xbf16>
    %68 = vector.extract_strided_slice %19 {offsets = [8, 96], sizes = [8, 32], strides = [1, 1]} : vector<16x128xbf16> to vector<8x32xbf16>
    %69 = vector.shape_cast %68 : vector<8x32xbf16> to vector<1x8x32xbf16>
    %70 = tpu.concatenate %55, %57, %59, %61, %63, %65, %67, %69 in 0 : vector<1x8x32xbf16>, vector<1x8x32xbf16>, vector<1x8x32xbf16>, vector<1x8x32xbf16>, vector<1x8x32xbf16>, vector<1x8x32xbf16>, vector<1x8x32xbf16>, vector<1x8x32xbf16> -> vector<8x8x32xbf16>
    "tpu.trace_start"() <{level = 10 : i32, message = "gqd,gsd->gqs"}> : () -> ()
    %cst_7 = arith.constant dense<0.000000e+00> : vector<8x8x8xf32>
    %71 = tpu.matmul %36, %53, %cst_7 {dimension_numbers = #tpu.dot_dimension_numbers<[2], [2], [1], [1], [0, 0, 0, 1, 1, 1], [0], [0]>} : vector<8x8x32xbf16>, vector<8x8x32xbf16>, vector<8x8x8xf32> -> vector<8x8x8xf32>
    "tpu.trace_stop"() : () -> ()
    %cst_8 = arith.constant dense<0xFF800000> : vector<8x8xf32>
    %72 = vector.multi_reduction <maximumf>, %71, %cst_8 [0] : vector<8x8x8xf32> to vector<8x8xf32>
    %73 = vector.shape_cast %72 : vector<8x8xf32> to vector<1x8x8xf32>
    %74 = vector.broadcast %73 : vector<1x8x8xf32> to vector<8x8x8xf32>
    %75 = arith.subf %71, %74 : vector<8x8x8xf32>
    %76 = math.exp %75 : vector<8x8x8xf32>
    %cst_9 = arith.constant dense<0.000000e+00> : vector<8x8xf32>
    %77 = vector.multi_reduction <add>, %76, %cst_9 [0] : vector<8x8x8xf32> to vector<8x8xf32>
    %78 = vector.shape_cast %77 : vector<8x8xf32> to vector<1x8x8xf32>
    %79 = tpu.reciprocal %78 {approx = true} : vector<1x8x8xf32> -> vector<1x8x8xf32>
    %80 = vector.broadcast %79 : vector<1x8x8xf32> to vector<8x8x8xf32>
    %81 = arith.mulf %76, %80 : vector<8x8x8xf32>
    %82 = arith.truncf %81 : vector<8x8x8xf32> to vector<8x8x8xbf16>
    "tpu.trace_start"() <{level = 10 : i32, message = "gqs,gsd->gqd"}> : () -> ()
    %cst_10 = arith.constant dense<0.000000e+00> : vector<8x8x32xf32>
    %83 = tpu.matmul %82, %70, %cst_10 {dimension_numbers = #tpu.dot_dimension_numbers<[2], [1], [1], [2], [0, 0, 0, 1, 1, 2], [0], [0]>} : vector<8x8x8xbf16>, vector<8x8x32xbf16>, vector<8x8x32xf32> -> vector<8x8x32xf32>
    "tpu.trace_stop"() : () -> ()
    %84 = vector.extract_strided_slice %83 {offsets = [0, 0, 0], sizes = [1, 8, 32], strides = [1, 1, 1]} : vector<8x8x32xf32> to vector<1x8x32xf32>
    %85 = vector.shape_cast %84 : vector<1x8x32xf32> to vector<8x32xf32>
    %86 = vector.extract_strided_slice %83 {offsets = [1, 0, 0], sizes = [1, 8, 32], strides = [1, 1, 1]} : vector<8x8x32xf32> to vector<1x8x32xf32>
    %87 = vector.shape_cast %86 : vector<1x8x32xf32> to vector<8x32xf32>
    %88 = vector.extract_strided_slice %83 {offsets = [2, 0, 0], sizes = [1, 8, 32], strides = [1, 1, 1]} : vector<8x8x32xf32> to vector<1x8x32xf32>
    %89 = vector.shape_cast %88 : vector<1x8x32xf32> to vector<8x32xf32>
    %90 = vector.extract_strided_slice %83 {offsets = [3, 0, 0], sizes = [1, 8, 32], strides = [1, 1, 1]} : vector<8x8x32xf32> to vector<1x8x32xf32>
    %91 = vector.shape_cast %90 : vector<1x8x32xf32> to vector<8x32xf32>
    %92 = tpu.concatenate %85, %87, %89, %91 in 1 : vector<8x32xf32>, vector<8x32xf32>, vector<8x32xf32>, vector<8x32xf32> -> vector<8x128xf32>
    %93 = vector.extract_strided_slice %83 {offsets = [4, 0, 0], sizes = [1, 8, 32], strides = [1, 1, 1]} : vector<8x8x32xf32> to vector<1x8x32xf32>
    %94 = vector.shape_cast %93 : vector<1x8x32xf32> to vector<8x32xf32>
    %95 = vector.extract_strided_slice %83 {offsets = [5, 0, 0], sizes = [1, 8, 32], strides = [1, 1, 1]} : vector<8x8x32xf32> to vector<1x8x32xf32>
    %96 = vector.shape_cast %95 : vector<1x8x32xf32> to vector<8x32xf32>
    %97 = vector.extract_strided_slice %83 {offsets = [6, 0, 0], sizes = [1, 8, 32], strides = [1, 1, 1]} : vector<8x8x32xf32> to vector<1x8x32xf32>
    %98 = vector.shape_cast %97 : vector<1x8x32xf32> to vector<8x32xf32>
    %99 = vector.extract_strided_slice %83 {offsets = [7, 0, 0], sizes = [1, 8, 32], strides = [1, 1, 1]} : vector<8x8x32xf32> to vector<1x8x32xf32>
    %100 = vector.shape_cast %99 : vector<1x8x32xf32> to vector<8x32xf32>
    %101 = tpu.concatenate %94, %96, %98, %100 in 1 : vector<8x32xf32>, vector<8x32xf32>, vector<8x32xf32>, vector<8x32xf32> -> vector<8x128xf32>
    %102 = tpu.concatenate %92, %101 in 0 : vector<8x128xf32>, vector<8x128xf32> -> vector<16x128xf32>
    %c0_11 = arith.constant 0 : index
    %c0_12 = arith.constant 0 : index
    %c0_13 = arith.constant 0 : index
    %103 = vector.load %arg2[%c0_11, %c0_12, %c0_13] : memref<2x128x32xbf16, #tpu.memory_space<vmem>>, vector<1x128x32xbf16>
    %104 = vector.shape_cast %103 : vector<1x128x32xbf16> to vector<128x32xbf16>
    %105 = arith.truncf %102 : vector<16x128xf32> to vector<16x128xbf16>
    %cst_14 = arith.constant dense<0.000000e+00> : vector<16x32xf32>
    %106 = tpu.matmul %105, %104, %cst_14 {dimension_numbers = #tpu.dot_dimension_numbers<[1], [0], [0], [1], [0, 0, 1, 1], [], []>} : vector<16x128xbf16>, vector<128x32xbf16>, vector<16x32xf32> -> vector<16x32xf32>
    %107 = vector.broadcast %3 : vector<1x32xf32> to vector<16x32xf32>
    %108 = arith.addf %106, %107 : vector<16x32xf32>
    %109 = arith.addf %108, %0 : vector<16x32xf32>
    %cst_15 = arith.constant dense<0.000000e+00> : vector<16xf32>
    %110 = vector.multi_reduction <add>, %109, %cst_15 [1] : vector<16x32xf32> to vector<16xf32>
    %111 = vector.shape_cast %110 : vector<16xf32> to vector<16x1xf32>
    %cst_16 = arith.constant 3.200000e+01 : f32
    %112 = vector.broadcast %cst_16 : f32 to vector<16x1xf32>
    %113 = arith.divf %111, %112 : vector<16x1xf32>
    %114 = vector.broadcast %113 : vector<16x1xf32> to vector<16x32xf32>
    %115 = arith.subf %109, %114 : vector<16x32xf32>
    %116 = arith.mulf %115, %115 : vector<16x32xf32>
    %cst_17 = arith.constant dense<0.000000e+00> : vector<16xf32>
    %117 = vector.multi_reduction <add>, %116, %cst_17 [1] : vector<16x32xf32> to vector<16xf32>
    %118 = vector.shape_cast %117 : vector<16xf32> to vector<16x1xf32>
    %cst_18 = arith.constant 3.200000e+01 : f32
    %119 = vector.broadcast %cst_18 : f32 to vector<16x1xf32>
    %120 = arith.divf %118, %119 : vector<16x1xf32>
    %121 = vector.broadcast %113 : vector<16x1xf32> to vector<16x32xf32>
    %122 = arith.subf %109, %121 : vector<16x32xf32>
    %cst_19 = arith.constant 9.99999974E-6 : f32
    %123 = vector.broadcast %cst_19 : f32 to vector<16x1xf32>
    %124 = arith.addf %120, %123 : vector<16x1xf32>
    %125 = math.rsqrt %124 : vector<16x1xf32>
    %126 = vector.broadcast %125 : vector<16x1xf32> to vector<16x32xf32>
    %127 = arith.mulf %122, %126 : vector<16x32xf32>
    %128 = vector.broadcast %4 : vector<1x32xf32> to vector<16x32xf32>
    %129 = arith.mulf %127, %128 : vector<16x32xf32>
    %130 = vector.broadcast %5 : vector<1x32xf32> to vector<16x32xf32>
    %131 = arith.addf %129, %130 : vector<16x32xf32>
    %c0_20 = arith.constant 0 : index
    %c0_21 = arith.constant 0 : index
    %c0_22 = arith.constant 0 : index
    %132 = vector.load %arg3[%c0_20, %c0_21, %c0_22] : memref<2x32x128xbf16, #tpu.memory_space<vmem>>, vector<1x32x128xbf16>
    %133 = vector.shape_cast %132 : vector<1x32x128xbf16> to vector<32x128xbf16>
    %134 = arith.truncf %131 : vector<16x32xf32> to vector<16x32xbf16>
    %cst_23 = arith.constant dense<0.000000e+00> : vector<16x128xf32>
    %135 = tpu.matmul %134, %133, %cst_23 {dimension_numbers = #tpu.dot_dimension_numbers<[1], [0], [0], [1], [0, 0, 1, 1], [], []>} : vector<16x32xbf16>, vector<32x128xbf16>, vector<16x128xf32> -> vector<16x128xf32>
    %136 = vector.broadcast %6 : vector<1x128xf32> to vector<16x128xf32>
    %137 = arith.addf %135, %136 : vector<16x128xf32>
    %cst_24 = arith.constant 0.000000e+00 : f32
    %138 = vector.broadcast %cst_24 : f32 to vector<16x128xf32>
    %139 = arith.maximumf %137, %138 : vector<16x128xf32>
    %c0_25 = arith.constant 0 : index
    %c0_26 = arith.constant 0 : index
    %c0_27 = arith.constant 0 : index
    %140 = vector.load %arg4[%c0_25, %c0_26, %c0_27] : memref<2x128x32xbf16, #tpu.memory_space<vmem>>, vector<1x128x32xbf16>
    %141 = vector.shape_cast %140 : vector<1x128x32xbf16> to vector<128x32xbf16>
    %142 = arith.truncf %139 : vector<16x128xf32> to vector<16x128xbf16>
    %cst_28 = arith.constant dense<0.000000e+00> : vector<16x32xf32>
    %143 = tpu.matmul %142, %141, %cst_28 {dimension_numbers = #tpu.dot_dimension_numbers<[1], [0], [0], [1], [0, 0, 1, 1], [], []>} : vector<16x128xbf16>, vector<128x32xbf16>, vector<16x32xf32> -> vector<16x32xf32>
    %144 = vector.broadcast %7 : vector<1x32xf32> to vector<16x32xf32>
    %145 = arith.addf %143, %144 : vector<16x32xf32>
    %146 = arith.addf %145, %131 : vector<16x32xf32>
    %cst_29 = arith.constant dense<0.000000e+00> : vector<16xf32>
    %147 = vector.multi_reduction <add>, %146, %cst_29 [1] : vector<16x32xf32> to vector<16xf32>
    %148 = vector.shape_cast %147 : vector<16xf32> to vector<16x1xf32>
    %cst_30 = arith.constant 3.200000e+01 : f32
    %149 = vector.broadcast %cst_30 : f32 to vector<16x1xf32>
    %150 = arith.divf %148, %149 : vector<16x1xf32>
    %151 = vector.broadcast %150 : vector<16x1xf32> to vector<16x32xf32>
    %152 = arith.subf %146, %151 : vector<16x32xf32>
    %153 = arith.mulf %152, %152 : vector<16x32xf32>
    %cst_31 = arith.constant dense<0.000000e+00> : vector<16xf32>
    %154 = vector.multi_reduction <add>, %153, %cst_31 [1] : vector<16x32xf32> to vector<16xf32>
    %155 = vector.shape_cast %154 : vector<16xf32> to vector<16x1xf32>
    %cst_32 = arith.constant 3.200000e+01 : f32
    %156 = vector.broadcast %cst_32 : f32 to vector<16x1xf32>
    %157 = arith.divf %155, %156 : vector<16x1xf32>
    %158 = vector.broadcast %150 : vector<16x1xf32> to vector<16x32xf32>
    %159 = arith.subf %146, %158 : vector<16x32xf32>
    %cst_33 = arith.constant 9.99999974E-6 : f32
    %160 = vector.broadcast %cst_33 : f32 to vector<16x1xf32>
    %161 = arith.addf %157, %160 : vector<16x1xf32>
    %162 = math.rsqrt %161 : vector<16x1xf32>
    %163 = vector.broadcast %162 : vector<16x1xf32> to vector<16x32xf32>
    %164 = arith.mulf %159, %163 : vector<16x32xf32>
    %165 = vector.broadcast %8 : vector<1x32xf32> to vector<16x32xf32>
    %166 = arith.mulf %164, %165 : vector<16x32xf32>
    %167 = vector.broadcast %9 : vector<1x32xf32> to vector<16x32xf32>
    %168 = arith.addf %166, %167 : vector<16x32xf32>
    %c1 = arith.constant 1 : index
    %c0_34 = arith.constant 0 : index
    %c0_35 = arith.constant 0 : index
    %169 = vector.load %arg5[%c1, %c0_34, %c0_35] : memref<2x8x128xf32, #tpu.memory_space<vmem>>, vector<1x8x128xf32>
    %170 = vector.shape_cast %169 : vector<1x8x128xf32> to vector<8x128xf32>
    %171 = vector.extract_strided_slice %170 {offsets = [0, 0], sizes = [1, 32], strides = [1, 1]} : vector<8x128xf32> to vector<1x32xf32>
    %172 = vector.extract_strided_slice %170 {offsets = [1, 0], sizes = [1, 32], strides = [1, 1]} : vector<8x128xf32> to vector<1x32xf32>
    %173 = vector.extract_strided_slice %170 {offsets = [2, 0], sizes = [1, 32], strides = [1, 1]} : vector<8x128xf32> to vector<1x32xf32>
    %174 = vector.extract_strided_slice %170 {offsets = [3, 0], sizes = [1, 128], strides = [1, 1]} : vector<8x128xf32> to vector<1x128xf32>
    %175 = vector.extract_strided_slice %170 {offsets = [4, 0], sizes = [1, 32], strides = [1, 1]} : vector<8x128xf32> to vector<1x32xf32>
    %176 = vector.extract_strided_slice %170 {offsets = [5, 0], sizes = [1, 32], strides = [1, 1]} : vector<8x128xf32> to vector<1x32xf32>
    %177 = vector.extract_strided_slice %170 {offsets = [6, 0], sizes = [1, 32], strides = [1, 1]} : vector<8x128xf32> to vector<1x32xf32>
    %c1_36 = arith.constant 1 : index
    %c0_37 = arith.constant 0 : index
    %c0_38 = arith.constant 0 : index
    %178 = vector.load %arg1[%c1_36, %c0_37, %c0_38] : memref<2x32x384xbf16, #tpu.memory_space<vmem>>, vector<1x32x384xbf16>
    %179 = vector.shape_cast %178 : vector<1x32x384xbf16> to vector<32x384xbf16>
    %180 = arith.truncf %168 : vector<16x32xf32> to vector<16x32xbf16>
    %cst_39 = arith.constant dense<0.000000e+00> : vector<16x384xf32>
    %181 = tpu.matmul %180, %179, %cst_39 {dimension_numbers = #tpu.dot_dimension_numbers<[1], [0], [0], [1], [0, 0, 1, 1], [], []>} : vector<16x32xbf16>, vector<32x384xbf16>, vector<16x384xf32> -> vector<16x384xf32>
    %182 = vector.extract_strided_slice %181 {offsets = [0, 0], sizes = [16, 128], strides = [1, 1]} : vector<16x384xf32> to vector<16x128xf32>
    %183 = arith.truncf %182 : vector<16x128xf32> to vector<16x128xbf16>
    %184 = vector.extract_strided_slice %181 {offsets = [0, 128], sizes = [16, 128], strides = [1, 1]} : vector<16x384xf32> to vector<16x128xf32>
    %185 = arith.truncf %184 : vector<16x128xf32> to vector<16x128xbf16>
    %186 = vector.extract_strided_slice %181 {offsets = [0, 256], sizes = [16, 128], strides = [1, 1]} : vector<16x384xf32> to vector<16x128xf32>
    %187 = arith.truncf %186 : vector<16x128xf32> to vector<16x128xbf16>
    %188 = vector.extract_strided_slice %183 {offsets = [0, 0], sizes = [8, 32], strides = [1, 1]} : vector<16x128xbf16> to vector<8x32xbf16>
    %189 = vector.shape_cast %188 : vector<8x32xbf16> to vector<1x8x32xbf16>
    %190 = vector.extract_strided_slice %183 {offsets = [0, 32], sizes = [8, 32], strides = [1, 1]} : vector<16x128xbf16> to vector<8x32xbf16>
    %191 = vector.shape_cast %190 : vector<8x32xbf16> to vector<1x8x32xbf16>
    %192 = vector.extract_strided_slice %183 {offsets = [0, 64], sizes = [8, 32], strides = [1, 1]} : vector<16x128xbf16> to vector<8x32xbf16>
    %193 = vector.shape_cast %192 : vector<8x32xbf16> to vector<1x8x32xbf16>
    %194 = vector.extract_strided_slice %183 {offsets = [0, 96], sizes = [8, 32], strides = [1, 1]} : vector<16x128xbf16> to vector<8x32xbf16>
    %195 = vector.shape_cast %194 : vector<8x32xbf16> to vector<1x8x32xbf16>
    %196 = vector.extract_strided_slice %183 {offsets = [8, 0], sizes = [8, 32], strides = [1, 1]} : vector<16x128xbf16> to vector<8x32xbf16>
    %197 = vector.shape_cast %196 : vector<8x32xbf16> to vector<1x8x32xbf16>
    %198 = vector.extract_strided_slice %183 {offsets = [8, 32], sizes = [8, 32], strides = [1, 1]} : vector<16x128xbf16> to vector<8x32xbf16>
    %199 = vector.shape_cast %198 : vector<8x32xbf16> to vector<1x8x32xbf16>
    %200 = vector.extract_strided_slice %183 {offsets = [8, 64], sizes = [8, 32], strides = [1, 1]} : vector<16x128xbf16> to vector<8x32xbf16>
    %201 = vector.shape_cast %200 : vector<8x32xbf16> to vector<1x8x32xbf16>
    %202 = vector.extract_strided_slice %183 {offsets = [8, 96], sizes = [8, 32], strides = [1, 1]} : vector<16x128xbf16> to vector<8x32xbf16>
    %203 = vector.shape_cast %202 : vector<8x32xbf16> to vector<1x8x32xbf16>
    %204 = tpu.concatenate %189, %191, %193, %195, %197, %199, %201, %203 in 0 : vector<1x8x32xbf16>, vector<1x8x32xbf16>, vector<1x8x32xbf16>, vector<1x8x32xbf16>, vector<1x8x32xbf16>, vector<1x8x32xbf16>, vector<1x8x32xbf16>, vector<1x8x32xbf16> -> vector<8x8x32xbf16>
    %205 = vector.extract_strided_slice %185 {offsets = [0, 0], sizes = [8, 32], strides = [1, 1]} : vector<16x128xbf16> to vector<8x32xbf16>
    %206 = vector.shape_cast %205 : vector<8x32xbf16> to vector<1x8x32xbf16>
    %207 = vector.extract_strided_slice %185 {offsets = [0, 32], sizes = [8, 32], strides = [1, 1]} : vector<16x128xbf16> to vector<8x32xbf16>
    %208 = vector.shape_cast %207 : vector<8x32xbf16> to vector<1x8x32xbf16>
    %209 = vector.extract_strided_slice %185 {offsets = [0, 64], sizes = [8, 32], strides = [1, 1]} : vector<16x128xbf16> to vector<8x32xbf16>
    %210 = vector.shape_cast %209 : vector<8x32xbf16> to vector<1x8x32xbf16>
    %211 = vector.extract_strided_slice %185 {offsets = [0, 96], sizes = [8, 32], strides = [1, 1]} : vector<16x128xbf16> to vector<8x32xbf16>
    %212 = vector.shape_cast %211 : vector<8x32xbf16> to vector<1x8x32xbf16>
    %213 = vector.extract_strided_slice %185 {offsets = [8, 0], sizes = [8, 32], strides = [1, 1]} : vector<16x128xbf16> to vector<8x32xbf16>
    %214 = vector.shape_cast %213 : vector<8x32xbf16> to vector<1x8x32xbf16>
    %215 = vector.extract_strided_slice %185 {offsets = [8, 32], sizes = [8, 32], strides = [1, 1]} : vector<16x128xbf16> to vector<8x32xbf16>
    %216 = vector.shape_cast %215 : vector<8x32xbf16> to vector<1x8x32xbf16>
    %217 = vector.extract_strided_slice %185 {offsets = [8, 64], sizes = [8, 32], strides = [1, 1]} : vector<16x128xbf16> to vector<8x32xbf16>
    %218 = vector.shape_cast %217 : vector<8x32xbf16> to vector<1x8x32xbf16>
    %219 = vector.extract_strided_slice %185 {offsets = [8, 96], sizes = [8, 32], strides = [1, 1]} : vector<16x128xbf16> to vector<8x32xbf16>
    %220 = vector.shape_cast %219 : vector<8x32xbf16> to vector<1x8x32xbf16>
    %221 = tpu.concatenate %206, %208, %210, %212, %214, %216, %218, %220 in 0 : vector<1x8x32xbf16>, vector<1x8x32xbf16>, vector<1x8x32xbf16>, vector<1x8x32xbf16>, vector<1x8x32xbf16>, vector<1x8x32xbf16>, vector<1x8x32xbf16>, vector<1x8x32xbf16> -> vector<8x8x32xbf16>
    %222 = vector.extract_strided_slice %187 {offsets = [0, 0], sizes = [8, 32], strides = [1, 1]} : vector<16x128xbf16> to vector<8x32xbf16>
    %223 = vector.shape_cast %222 : vector<8x32xbf16> to vector<1x8x32xbf16>
    %224 = vector.extract_strided_slice %187 {offsets = [0, 32], sizes = [8, 32], strides = [1, 1]} : vector<16x128xbf16> to vector<8x32xbf16>
    %225 = vector.shape_cast %224 : vector<8x32xbf16> to vector<1x8x32xbf16>
    %226 = vector.extract_strided_slice %187 {offsets = [0, 64], sizes = [8, 32], strides = [1, 1]} : vector<16x128xbf16> to vector<8x32xbf16>
    %227 = vector.shape_cast %226 : vector<8x32xbf16> to vector<1x8x32xbf16>
    %228 = vector.extract_strided_slice %187 {offsets = [0, 96], sizes = [8, 32], strides = [1, 1]} : vector<16x128xbf16> to vector<8x32xbf16>
    %229 = vector.shape_cast %228 : vector<8x32xbf16> to vector<1x8x32xbf16>
    %230 = vector.extract_strided_slice %187 {offsets = [8, 0], sizes = [8, 32], strides = [1, 1]} : vector<16x128xbf16> to vector<8x32xbf16>
    %231 = vector.shape_cast %230 : vector<8x32xbf16> to vector<1x8x32xbf16>
    %232 = vector.extract_strided_slice %187 {offsets = [8, 32], sizes = [8, 32], strides = [1, 1]} : vector<16x128xbf16> to vector<8x32xbf16>
    %233 = vector.shape_cast %232 : vector<8x32xbf16> to vector<1x8x32xbf16>
    %234 = vector.extract_strided_slice %187 {offsets = [8, 64], sizes = [8, 32], strides = [1, 1]} : vector<16x128xbf16> to vector<8x32xbf16>
    %235 = vector.shape_cast %234 : vector<8x32xbf16> to vector<1x8x32xbf16>
    %236 = vector.extract_strided_slice %187 {offsets = [8, 96], sizes = [8, 32], strides = [1, 1]} : vector<16x128xbf16> to vector<8x32xbf16>
    %237 = vector.shape_cast %236 : vector<8x32xbf16> to vector<1x8x32xbf16>
    %238 = tpu.concatenate %223, %225, %227, %229, %231, %233, %235, %237 in 0 : vector<1x8x32xbf16>, vector<1x8x32xbf16>, vector<1x8x32xbf16>, vector<1x8x32xbf16>, vector<1x8x32xbf16>, vector<1x8x32xbf16>, vector<1x8x32xbf16>, vector<1x8x32xbf16> -> vector<8x8x32xbf16>
    "tpu.trace_start"() <{level = 10 : i32, message = "gqd,gsd->gqs"}> : () -> ()
    %cst_40 = arith.constant dense<0.000000e+00> : vector<8x8x8xf32>
    %239 = tpu.matmul %204, %221, %cst_40 {dimension_numbers = #tpu.dot_dimension_numbers<[2], [2], [1], [1], [0, 0, 0, 1, 1, 1], [0], [0]>} : vector<8x8x32xbf16>, vector<8x8x32xbf16>, vector<8x8x8xf32> -> vector<8x8x8xf32>
    "tpu.trace_stop"() : () -> ()
    %cst_41 = arith.constant dense<0xFF800000> : vector<8x8xf32>
    %240 = vector.multi_reduction <maximumf>, %239, %cst_41 [0] : vector<8x8x8xf32> to vector<8x8xf32>
    %241 = vector.shape_cast %240 : vector<8x8xf32> to vector<1x8x8xf32>
    %242 = vector.broadcast %241 : vector<1x8x8xf32> to vector<8x8x8xf32>
    %243 = arith.subf %239, %242 : vector<8x8x8xf32>
    %244 = math.exp %243 : vector<8x8x8xf32>
    %cst_42 = arith.constant dense<0.000000e+00> : vector<8x8xf32>
    %245 = vector.multi_reduction <add>, %244, %cst_42 [0] : vector<8x8x8xf32> to vector<8x8xf32>
    %246 = vector.shape_cast %245 : vector<8x8xf32> to vector<1x8x8xf32>
    %247 = tpu.reciprocal %246 {approx = true} : vector<1x8x8xf32> -> vector<1x8x8xf32>
    %248 = vector.broadcast %247 : vector<1x8x8xf32> to vector<8x8x8xf32>
    %249 = arith.mulf %244, %248 : vector<8x8x8xf32>
    %250 = arith.truncf %249 : vector<8x8x8xf32> to vector<8x8x8xbf16>
    "tpu.trace_start"() <{level = 10 : i32, message = "gqs,gsd->gqd"}> : () -> ()
    %cst_43 = arith.constant dense<0.000000e+00> : vector<8x8x32xf32>
    %251 = tpu.matmul %250, %238, %cst_43 {dimension_numbers = #tpu.dot_dimension_numbers<[2], [1], [1], [2], [0, 0, 0, 1, 1, 2], [0], [0]>} : vector<8x8x8xbf16>, vector<8x8x32xbf16>, vector<8x8x32xf32> -> vector<8x8x32xf32>
    "tpu.trace_stop"() : () -> ()
    %252 = vector.extract_strided_slice %251 {offsets = [0, 0, 0], sizes = [1, 8, 32], strides = [1, 1, 1]} : vector<8x8x32xf32> to vector<1x8x32xf32>
    %253 = vector.shape_cast %252 : vector<1x8x32xf32> to vector<8x32xf32>
    %254 = vector.extract_strided_slice %251 {offsets = [1, 0, 0], sizes = [1, 8, 32], strides = [1, 1, 1]} : vector<8x8x32xf32> to vector<1x8x32xf32>
    %255 = vector.shape_cast %254 : vector<1x8x32xf32> to vector<8x32xf32>
    %256 = vector.extract_strided_slice %251 {offsets = [2, 0, 0], sizes = [1, 8, 32], strides = [1, 1, 1]} : vector<8x8x32xf32> to vector<1x8x32xf32>
    %257 = vector.shape_cast %256 : vector<1x8x32xf32> to vector<8x32xf32>
    %258 = vector.extract_strided_slice %251 {offsets = [3, 0, 0], sizes = [1, 8, 32], strides = [1, 1, 1]} : vector<8x8x32xf32> to vector<1x8x32xf32>
    %259 = vector.shape_cast %258 : vector<1x8x32xf32> to vector<8x32xf32>
    %260 = tpu.concatenate %253, %255, %257, %259 in 1 : vector<8x32xf32>, vector<8x32xf32>, vector<8x32xf32>, vector<8x32xf32> -> vector<8x128xf32>
    %261 = vector.extract_strided_slice %251 {offsets = [4, 0, 0], sizes = [1, 8, 32], strides = [1, 1, 1]} : vector<8x8x32xf32> to vector<1x8x32xf32>
    %262 = vector.shape_cast %261 : vector<1x8x32xf32> to vector<8x32xf32>
    %263 = vector.extract_strided_slice %251 {offsets = [5, 0, 0], sizes = [1, 8, 32], strides = [1, 1, 1]} : vector<8x8x32xf32> to vector<1x8x32xf32>
    %264 = vector.shape_cast %263 : vector<1x8x32xf32> to vector<8x32xf32>
    %265 = vector.extract_strided_slice %251 {offsets = [6, 0, 0], sizes = [1, 8, 32], strides = [1, 1, 1]} : vector<8x8x32xf32> to vector<1x8x32xf32>
    %266 = vector.shape_cast %265 : vector<1x8x32xf32> to vector<8x32xf32>
    %267 = vector.extract_strided_slice %251 {offsets = [7, 0, 0], sizes = [1, 8, 32], strides = [1, 1, 1]} : vector<8x8x32xf32> to vector<1x8x32xf32>
    %268 = vector.shape_cast %267 : vector<1x8x32xf32> to vector<8x32xf32>
    %269 = tpu.concatenate %262, %264, %266, %268 in 1 : vector<8x32xf32>, vector<8x32xf32>, vector<8x32xf32>, vector<8x32xf32> -> vector<8x128xf32>
    %270 = tpu.concatenate %260, %269 in 0 : vector<8x128xf32>, vector<8x128xf32> -> vector<16x128xf32>
    %c1_44 = arith.constant 1 : index
    %c0_45 = arith.constant 0 : index
    %c0_46 = arith.constant 0 : index
    %271 = vector.load %arg2[%c1_44, %c0_45, %c0_46] : memref<2x128x32xbf16, #tpu.memory_space<vmem>>, vector<1x128x32xbf16>
    %272 = vector.shape_cast %271 : vector<1x128x32xbf16> to vector<128x32xbf16>
    %273 = arith.truncf %270 : vector<16x128xf32> to vector<16x128xbf16>
    %cst_47 = arith.constant dense<0.000000e+00> : vector<16x32xf32>
    %274 = tpu.matmul %273, %272, %cst_47 {dimension_numbers = #tpu.dot_dimension_numbers<[1], [0], [0], [1], [0, 0, 1, 1], [], []>} : vector<16x128xbf16>, vector<128x32xbf16>, vector<16x32xf32> -> vector<16x32xf32>
    %275 = vector.broadcast %171 : vector<1x32xf32> to vector<16x32xf32>
    %276 = arith.addf %274, %275 : vector<16x32xf32>
    %277 = arith.addf %276, %168 : vector<16x32xf32>
    %cst_48 = arith.constant dense<0.000000e+00> : vector<16xf32>
    %278 = vector.multi_reduction <add>, %277, %cst_48 [1] : vector<16x32xf32> to vector<16xf32>
    %279 = vector.shape_cast %278 : vector<16xf32> to vector<16x1xf32>
    %cst_49 = arith.constant 3.200000e+01 : f32
    %280 = vector.broadcast %cst_49 : f32 to vector<16x1xf32>
    %281 = arith.divf %279, %280 : vector<16x1xf32>
    %282 = vector.broadcast %281 : vector<16x1xf32> to vector<16x32xf32>
    %283 = arith.subf %277, %282 : vector<16x32xf32>
    %284 = arith.mulf %283, %283 : vector<16x32xf32>
    %cst_50 = arith.constant dense<0.000000e+00> : vector<16xf32>
    %285 = vector.multi_reduction <add>, %284, %cst_50 [1] : vector<16x32xf32> to vector<16xf32>
    %286 = vector.shape_cast %285 : vector<16xf32> to vector<16x1xf32>
    %cst_51 = arith.constant 3.200000e+01 : f32
    %287 = vector.broadcast %cst_51 : f32 to vector<16x1xf32>
    %288 = arith.divf %286, %287 : vector<16x1xf32>
    %289 = vector.broadcast %281 : vector<16x1xf32> to vector<16x32xf32>
    %290 = arith.subf %277, %289 : vector<16x32xf32>
    %cst_52 = arith.constant 9.99999974E-6 : f32
    %291 = vector.broadcast %cst_52 : f32 to vector<16x1xf32>
    %292 = arith.addf %288, %291 : vector<16x1xf32>
    %293 = math.rsqrt %292 : vector<16x1xf32>
    %294 = vector.broadcast %293 : vector<16x1xf32> to vector<16x32xf32>
    %295 = arith.mulf %290, %294 : vector<16x32xf32>
    %296 = vector.broadcast %172 : vector<1x32xf32> to vector<16x32xf32>
    %297 = arith.mulf %295, %296 : vector<16x32xf32>
    %298 = vector.broadcast %173 : vector<1x32xf32> to vector<16x32xf32>
    %299 = arith.addf %297, %298 : vector<16x32xf32>
    %c1_53 = arith.constant 1 : index
    %c0_54 = arith.constant 0 : index
    %c0_55 = arith.constant 0 : index
    %300 = vector.load %arg3[%c1_53, %c0_54, %c0_55] : memref<2x32x128xbf16, #tpu.memory_space<vmem>>, vector<1x32x128xbf16>
    %301 = vector.shape_cast %300 : vector<1x32x128xbf16> to vector<32x128xbf16>
    %302 = arith.truncf %299 : vector<16x32xf32> to vector<16x32xbf16>
    %cst_56 = arith.constant dense<0.000000e+00> : vector<16x128xf32>
    %303 = tpu.matmul %302, %301, %cst_56 {dimension_numbers = #tpu.dot_dimension_numbers<[1], [0], [0], [1], [0, 0, 1, 1], [], []>} : vector<16x32xbf16>, vector<32x128xbf16>, vector<16x128xf32> -> vector<16x128xf32>
    %304 = vector.broadcast %174 : vector<1x128xf32> to vector<16x128xf32>
    %305 = arith.addf %303, %304 : vector<16x128xf32>
    %cst_57 = arith.constant 0.000000e+00 : f32
    %306 = vector.broadcast %cst_57 : f32 to vector<16x128xf32>
    %307 = arith.maximumf %305, %306 : vector<16x128xf32>
    %c1_58 = arith.constant 1 : index
    %c0_59 = arith.constant 0 : index
    %c0_60 = arith.constant 0 : index
    %308 = vector.load %arg4[%c1_58, %c0_59, %c0_60] : memref<2x128x32xbf16, #tpu.memory_space<vmem>>, vector<1x128x32xbf16>
    %309 = vector.shape_cast %308 : vector<1x128x32xbf16> to vector<128x32xbf16>
    %310 = arith.truncf %307 : vector<16x128xf32> to vector<16x128xbf16>
    %cst_61 = arith.constant dense<0.000000e+00> : vector<16x32xf32>
    %311 = tpu.matmul %310, %309, %cst_61 {dimension_numbers = #tpu.dot_dimension_numbers<[1], [0], [0], [1], [0, 0, 1, 1], [], []>} : vector<16x128xbf16>, vector<128x32xbf16>, vector<16x32xf32> -> vector<16x32xf32>
    %312 = vector.broadcast %175 : vector<1x32xf32> to vector<16x32xf32>
    %313 = arith.addf %311, %312 : vector<16x32xf32>
    %314 = arith.addf %313, %299 : vector<16x32xf32>
    %cst_62 = arith.constant dense<0.000000e+00> : vector<16xf32>
    %315 = vector.multi_reduction <add>, %314, %cst_62 [1] : vector<16x32xf32> to vector<16xf32>
    %316 = vector.shape_cast %315 : vector<16xf32> to vector<16x1xf32>
    %cst_63 = arith.constant 3.200000e+01 : f32
    %317 = vector.broadcast %cst_63 : f32 to vector<16x1xf32>
    %318 = arith.divf %316, %317 : vector<16x1xf32>
    %319 = vector.broadcast %318 : vector<16x1xf32> to vector<16x32xf32>
    %320 = arith.subf %314, %319 : vector<16x32xf32>
    %321 = arith.mulf %320, %320 : vector<16x32xf32>
    %cst_64 = arith.constant dense<0.000000e+00> : vector<16xf32>
    %322 = vector.multi_reduction <add>, %321, %cst_64 [1] : vector<16x32xf32> to vector<16xf32>
    %323 = vector.shape_cast %322 : vector<16xf32> to vector<16x1xf32>
    %cst_65 = arith.constant 3.200000e+01 : f32
    %324 = vector.broadcast %cst_65 : f32 to vector<16x1xf32>
    %325 = arith.divf %323, %324 : vector<16x1xf32>
    %326 = vector.broadcast %318 : vector<16x1xf32> to vector<16x32xf32>
    %327 = arith.subf %314, %326 : vector<16x32xf32>
    %cst_66 = arith.constant 9.99999974E-6 : f32
    %328 = vector.broadcast %cst_66 : f32 to vector<16x1xf32>
    %329 = arith.addf %325, %328 : vector<16x1xf32>
    %330 = math.rsqrt %329 : vector<16x1xf32>
    %331 = vector.broadcast %330 : vector<16x1xf32> to vector<16x32xf32>
    %332 = arith.mulf %327, %331 : vector<16x32xf32>
    %333 = vector.broadcast %176 : vector<1x32xf32> to vector<16x32xf32>
    %334 = arith.mulf %332, %333 : vector<16x32xf32>
    %335 = vector.broadcast %177 : vector<1x32xf32> to vector<16x32xf32>
    %336 = arith.addf %334, %335 : vector<16x32xf32>
    %337 = vector.shape_cast %336 : vector<16x32xf32> to vector<2x8x32xf32>
    %cst_67 = arith.constant dense<0.000000e+00> : vector<2x32xf32>
    %338 = vector.multi_reduction <add>, %337, %cst_67 [1] : vector<2x8x32xf32> to vector<2x32xf32>
    %cst_68 = arith.constant 8.000000e+00 : f32
    %339 = vector.broadcast %cst_68 : f32 to vector<2x32xf32>
    %340 = arith.divf %338, %339 : vector<2x32xf32>
    %c0_69 = arith.constant 0 : index
    %c0_70 = arith.constant 0 : index
    %341 = vector.load %arg6[%c0_69, %c0_70] : memref<32x10xf32, #tpu.memory_space<vmem>>, vector<32x10xf32>
    %cst_71 = arith.constant dense<0.000000e+00> : vector<2x10xf32>
    %342 = tpu.matmul %340, %341, %cst_71 {dimension_numbers = #tpu.dot_dimension_numbers<[1], [0], [0], [1], [0, 0, 1, 1], [], []>} : vector<2x32xf32>, vector<32x10xf32>, vector<2x10xf32> -> vector<2x10xf32>
    %c0_72 = arith.constant 0 : index
    %c0_73 = arith.constant 0 : index
    %343 = vector.load %arg7[%c0_72, %c0_73] : memref<1x10xf32, #tpu.memory_space<vmem>>, vector<1x10xf32>
    %344 = vector.broadcast %343 : vector<1x10xf32> to vector<2x10xf32>
    %345 = arith.addf %342, %344 : vector<2x10xf32>
    %cst_74 = arith.constant dense<0xFF800000> : vector<2xf32>
    %346 = vector.multi_reduction <maximumf>, %345, %cst_74 [1] : vector<2x10xf32> to vector<2xf32>
    %347 = vector.shape_cast %346 : vector<2xf32> to vector<2x1xf32>
    %348 = vector.broadcast %347 : vector<2x1xf32> to vector<2x10xf32>
    %349 = arith.subf %345, %348 : vector<2x10xf32>
    %350 = math.exp %349 : vector<2x10xf32>
    %cst_75 = arith.constant dense<0.000000e+00> : vector<2xf32>
    %351 = vector.multi_reduction <add>, %350, %cst_75 [1] : vector<2x10xf32> to vector<2xf32>
    %352 = vector.shape_cast %351 : vector<2xf32> to vector<2x1xf32>
    %353 = math.log %352 : vector<2x1xf32>
    %354 = vector.broadcast %353 : vector<2x1xf32> to vector<2x10xf32>
    %355 = arith.subf %349, %354 : vector<2x10xf32>
    %c0_76 = arith.constant 0 : index
    %c0_77 = arith.constant 0 : index
    %356 = vector.load %arg8[%c0_76, %c0_77] : memref<2x10xf32, #tpu.memory_space<vmem>>, vector<2x10xf32>
    tpu.vector_store %arg8[%c0_76, %c0_77], %355 {strides = array<i32>} : memref<2x10xf32, #tpu.memory_space<vmem>>, vector<2x10xf32>,
    return
  }
}

</mosaic_0001>

<bundles_post_ra>
// kernel: tpu_custom_call.1
= control target key start
LH: loop header
LB: loop body
LE: loop exit
PB: predicated region body
PF: predicated region fallthrough
CT: control target
= control target key end

     0   :  { %s2761_s0 = inlined_call_operand.vmem [shape: f32[16,32], index: 0, kind: input, shape index: {}]   ;;  %s2762_s1 = inlined_call_operand.vmem [shape: bf16[2,32,384], index: 1, kind: input, shape index: {}]   ;;  %s2763_s2 = inlined_call_operand.vmem [shape: bf16[2,128,32], index: 2, kind: input, shape index: {}]   ;;  %s2764_s3 = inlined_call_operand.vmem [shape: bf16[2,32,128], index: 3, kind: input, shape index: {}]   ;;  %s2765_s4 = inlined_call_operand.vmem [shape: bf16[2,128,32], index: 4, kind: input, shape index: {}]   ;;  %s2766_s5 = inlined_call_operand.vmem [shape: f32[2,8,128], index: 5, kind: input, shape index: {}]   ;;  %s2767_s6 = inlined_call_operand.vmem [shape: f32[32,10], index: 6, kind: input, shape index: {}]   ;;  %s2768_s7 = inlined_call_operand.vmem [shape: f32[1,10], index: 7, kind: input, shape index: {}]   ;;  %s2769_s8 = inlined_call_operand.hbm [shape: f32[2,10], index: 8, kind: output, shape index: {}]  }
   0x1   :  { %v1833_v0 = vld [vmem:[%s2762_s1 + $0x18] sm:$0xf]  ;;  %v2101_v1 = vld [vmem:[%s2762_s1 + $0x20] sm:$0xf0]  ;;  %v2100_v2 = vld [vmem:[%s2762_s1 + $0x1c] sm:$0xf] }
   0x2   :  { %v1834_v3 = vor.u32 %v2101_v1, %v1833_v0  ;;  %v1835_v4 = vld [vmem:[%s2762_s1 + $0x24] sm:$0xf0]  ;;  %v1821_v5 = vld [vmem:[%s2762_s1] sm:$0xf]  ;;  %v2098_v6 = vld [vmem:[%s2762_s1 + $0x8] sm:$0xf0] }
   0x3   :  { %v1838_v7 = vor.u32 %v2100_v2, %v1835_v4  ;;  %v2097_v8 = vld [vmem:[%s2762_s1 + $0x4] sm:$0xf]  ;;  %v1823_v9 = vld [vmem:[%s2762_s1 + $0xc] sm:$0xf0]  ;;  %v1822_v11 = vor.u32 %v2098_v6, %v1821_v5  ;;  %v2351_v12 = vld [vmem:[%s2761_s0 + $0x8] sm:$0xff] }
   0x4   :  { %v2346_v10 = vld [vmem:[%s2761_s0] sm:$0xff]  ;;  %85 = vmatpush.bf16.msra.mxu0 %v1834_v3 }
   0x5   :  { %13 = vsyncpa [#allocation3], 0  ;;  %99 = vmatpush.bf16.msra.mxu2 %v1838_v7  ;;  %v1826_v13 = vor.u32 %v2097_v8, %v1823_v9  ;;  %v42_v14 = vpack.c.bf16 %v2351_v12, %v2346_v10  ;;  %vm75_vm0 = vcmask 261120   ;;  %s2268_s25 = smov 96   ;;  %v1841_v17 = vld [vmem:[%s2762_s1 + $0x20] sm:$0xf] }
   0x6   :  { %v2102_v18 = vld [vmem:[%s2762_s1 + $0x28] sm:$0xf0]  ;;  %v1829_v20 = vld [vmem:[%s2762_s1 + $0x8] sm:$0xf]  ;;  %v2099_v21 = vld [vmem:[%s2762_s1 + $0x10] sm:$0xf0] }
   0x7   :  { %v1842_v19 = vor.u32 %v2102_v18, %v1841_v17  ;;  %v1830_v24 = vor.u32 %v2099_v21, %v1829_v20  ;;  %s2269_s11 = smov 64   ;;  %s2270_s12 = smov 32   ;;  %vm396_vm1 = vcmask 1043456   ;;  %vm321_vm2 = vcmask 64512  }
   0x8   :  { %86 = vmatpush.bf16.msra.mxu0 %v1822_v11  ;;  %vm559_vm3 = vcmask 523264   ;;  %vm561_vm4 = vcmask 785408   ;;  %s2273_s28 = smov [#allocation2]   ;;  %s1810_s9 = sshll.u32 %s2769_s8, 4  ;;  %s1811_s9 = int_to_ptr.hbm [resolvable:$true] %s1810_s9 }
   0x9   :  { %100 = vmatpush.bf16.msra.mxu2 %v1826_v13  ;;  %s1808_s29 = sshll.u32 %s2273_s28, 4  ;;  %s1809_s29 = int_to_ptr.vmem [resolvable:$true] %s1808_s29 }
   0xb   :  { %1843 = vmatmul.msk.bf16.vlgmr.msra.gmra.mxu0 %vm75_vm0, %v42_v14 }
   0xc   :  { %1844 = vmatmul.msk.bf16.vlgmr.msra.gmra.mxu2 %vm75_vm0, %v42_v14 }
   0xd   :  { %113 = vmatpush.bf16.msrb.mxu2 %v1842_v19 }
  0x11   :  { %114 = vmatpush.bf16.msrb.mxu2 %v1830_v24 }
  0x1c   :  { %1845 = vmatmul.msk.bf16.vlgmr.msrb.gmra.mxu2 %vm75_vm0, %v42_v14 }
  0x88   :  { %v88_v15 = vpop.f32.mrf.mxu0 }
  0x89   :  { %v121_v16 = vpack.c.bf16 %v88_v15, %v88_v15 }
  0x8b   :  { %128 = vrot.lane.b32.xlu2 %v121_v16, %s2268_s25 }
  0x8f   :  { %v102_v22 = vpop.f32.mrf.mxu2 }
  0x90   :  { %v123_v23 = vpack.c.bf16 %v102_v22, %v102_v22  ;;  %v90_v29 = vpop.f32.mrf.mxu0 }
  0x91   :  { %v122_v30 = vpack.c.bf16 %v90_v29, %v90_v29 }
  0x92   :  { %144 = vrot.lane.b32.xlu1 %v123_v23, %s2269_s11  ;;  %146 = vrot.lane.b32.xlu0 %v123_v23, %s2270_s12  ;;  %v173_v25 = vsel %vm75_vm0, %v123_v23, 0 }
  0x93   :  { %182 = vmatpush.bf16.xpose.msra.mxu3 %v173_v25  ;;  %130 = vrot.lane.b32.xlu2 %v121_v16, %s2269_s11 }
  0x97   :  { %v104_v26 = vpop.f32.mrf.mxu2 }
  0x98   :  { %v124_v27 = vpack.c.bf16 %v104_v26, %v104_v26 }
  0x9a   :  { %142 = vrot.lane.b32.xlu0 %v123_v23, %s2268_s25  ;;  %132 = vrot.lane.b32.xlu1 %v121_v16, %s2270_s12  ;;  %v249_v28 = vsel %vm75_vm0, %v124_v27, 0 }
  0x9b   :  { %1846 = vmatmul.msk.bf16.vlgmr.msra.gmra.mxu3 %vm75_vm0, %v121_v16  ;;  %151 = vrot.lane.b32.xlu2 %v124_v27, %s2269_s11 }
  0x9c   :  { %258 = vmatpush.bf16.xpose.msrb.mxu3 %v249_v28 }
  0x9f   :  { %v116_v46 = vpop.f32.mrf.mxu2 }
  0xa0   :  { %v125_v47 = vpack.c.bf16 %v116_v46, %v116_v46 }
  0xa2   :  { %153 = vrot.lane.b32.xlu0 %v124_v27, %s2270_s12  ;;  %149 = vrot.lane.b32.xlu1 %v124_v27, %s2268_s25  ;;  %v398_v50 = vsel %vm396_vm1, %v125_v47, 0 }
  0xa3   :  { %137 = vrot.lane.b32.xlu2 %v122_v30, %s2269_s11 }
  0xa4   :  { %407 = vmatpush.bf16.msra.mxu3 %v398_v50 }
  0xa7   :  { %v118_v52 = vpop.f32.mrf.mxu2 }
  0xa8   :  { %v126_v53 = vpack.c.bf16 %v118_v52, %v118_v52 }
  0xaa   :  { %135 = vrot.lane.b32.xlu1 %v122_v30, %s2268_s25  ;;  %139 = vrot.lane.b32.xlu0 %v122_v30, %s2270_s12  ;;  %v474_v55 = vsel %vm396_vm1, %v126_v53, 0 }
  0xab   :  { %1850 = vmatmul.msk.bf16.vlgmr.msrb.gmra.mxu3 %vm75_vm0, %v122_v30  ;;  %158 = vrot.lane.b32.xlu2 %v125_v47, %s2269_s11 }
  0xac   :  { %483 = vmatpush.bf16.msrb.mxu3 %v474_v55 }
  0xb2   :  { %156 = vrot.lane.b32.xlu1 %v125_v47, %s2268_s25  ;;  %160 = vrot.lane.b32.xlu0 %v125_v47, %s2270_s12 }
  0xb3   :  { %165 = vrot.lane.b32.xlu2 %v126_v53, %s2269_s11 }
  0xba   :  { %163 = vrot.lane.b32.xlu1 %v126_v53, %s2268_s25  ;;  %167 = vrot.lane.b32.xlu0 %v126_v53, %s2270_s12 }
  0xe5   :  { %v129_v31 = vpop.permute.xlu2 %128 }
  0xed   :  { %v131_v32 = vpop.permute.xlu2 %130 }
  0xf5   :  { %v152_v33 = vpop.permute.xlu2 %151 }
  0xf6   :  { %v287_v38 = vsel %vm75_vm0, %v152_v33, 0 }
  0xfd   :  { %v138_v48 = vpop.permute.xlu2 %137 }
 0x104   :  { %v145_v34 = vpop.permute.xlu1 %144  ;;  %v147_v35 = vpop.permute.xlu0 %146 }
 0x105   :  { %v230_v36 = vsel %vm75_vm0, %v147_v35, 0  ;;  %v211_v37 = vsel %vm75_vm0, %v145_v34, 0  ;;  %v159_v61 = vpop.permute.xlu2 %158 }
 0x106   :  { %220 = vmatpush.bf16.xpose.msra.mxu1 %v211_v37  ;;  %239 = vmatpush.bf16.xpose.msra.mxu2 %v230_v36  ;;  %v436_v1 = vsel %vm396_vm1, %v159_v61, 0 }
 0x10c   :  { %v143_v39 = vpop.permute.xlu0 %142  ;;  %v133_v40 = vpop.permute.xlu1 %132 }
 0x10d   :  { %1848 = vmatmul.msk.bf16.vlgmr.msra.gmra.mxu1 %vm75_vm0, %v131_v32  ;;  %1849 = vmatmul.msk.bf16.vlgmr.msra.gmra.mxu2 %vm75_vm0, %v133_v40  ;;  %v192_v41 = vsel %vm75_vm0, %v143_v39, 0  ;;  %v166_v2 = vpop.permute.xlu2 %165 }
 0x10e   :  { %296 = vmatpush.bf16.xpose.msrb.mxu1 %v287_v38  ;;  %201 = vmatpush.bf16.xpose.msrb.mxu0 %v192_v41  ;;  %v512_v5 = vsel %vm396_vm1, %v166_v2, 0 }
 0x114   :  { %v154_v42 = vpop.permute.xlu0 %153  ;;  %v150_v43 = vpop.permute.xlu1 %149 }
 0x115   :  { %v306_v44 = vsel %vm75_vm0, %v154_v42, 0  ;;  %v268_v45 = vsel %vm75_vm0, %v150_v43, 0  ;;  %1847 = vmatmul.msk.bf16.vlgmr.msrb.gmra.mxu0 %vm75_vm0, %v129_v31 }
 0x116   :  { %277 = vmatpush.bf16.xpose.msra.mxu0 %v268_v45  ;;  %315 = vmatpush.bf16.xpose.msrb.mxu2 %v306_v44 }
 0x117   :  { %445 = vmatpush.bf16.msra.mxu1 %v436_v1 }
 0x11c   :  { %v140_v49 = vpop.permute.xlu0 %139  ;;  %v136_v54 = vpop.permute.xlu1 %135 }
 0x11d   :  { %1852 = vmatmul.msk.bf16.vlgmr.msrb.gmra.mxu1 %vm75_vm0, %v138_v48  ;;  %1853 = vmatmul.msk.bf16.vlgmr.msrb.gmra.mxu2 %vm75_vm0, %v140_v49 }
 0x11e   :  { %v184_v51 = vpop.f32.mrf.mxu3  ;;  %521 = vmatpush.bf16.msrb.mxu1 %v512_v5 }
 0x11f   :  { %v322_v16 = vsel %vm321_vm2, %v184_v51, -inf }
 0x124   :  { %v157_v27 = vpop.permute.xlu1 %156  ;;  %v161_v28 = vpop.permute.xlu0 %160 }
 0x125   :  { %1851 = vmatmul.msk.bf16.vlgmr.msra.gmra.mxu0 %vm75_vm0, %v136_v54  ;;  %v417_v40 = vsel %vm396_vm1, %v157_v27, 0  ;;  %v455_v43 = vsel %vm396_vm1, %v161_v28, 0 }
 0x126   :  { %v186_v56 = vpop.f32.mrf.mxu3  ;;  %426 = vmatpush.bf16.msrb.mxu0 %v417_v40  ;;  %464 = vmatpush.bf16.msra.mxu2 %v455_v43 }
 0x12c   :  { %v164_v46 = vpop.permute.xlu1 %163  ;;  %v168_v47 = vpop.permute.xlu0 %167 }
 0x12d   :  { %v493_v48 = vsel %vm396_vm1, %v164_v46, 0  ;;  %v531_v49 = vsel %vm396_vm1, %v168_v47, 0 }
 0x12e   :  { %v260_v57 = vpop.f32.mrf.mxu3  ;;  %502 = vmatpush.bf16.msra.mxu0 %v493_v48  ;;  %540 = vmatpush.bf16.msrb.mxu2 %v531_v49 }
 0x12f   :  { %v326_v7 = vsel %vm321_vm2, %v260_v57, -inf }
 0x130   :  { %v327_v20 = vmax.f32 %v322_v16, %v326_v7 }
 0x136   :  { %v262_v58 = vpop.f32.mrf.mxu3 }
 0x18a   :  { %v222_v59 = vpop.f32.mrf.mxu1 }
 0x18b   :  { %v324_v17 = vsel %vm321_vm2, %v222_v59, -inf }
 0x190   :  { %v241_v60 = vpop.f32.mrf.mxu2 }
 0x191   :  { %v325_v8 = vsel %vm321_vm2, %v241_v60, -inf }
 0x192   :  { %v203_v62 = vpop.f32.mrf.mxu0  ;;  %v224_v63 = vpop.f32.mrf.mxu1 }
 0x193   :  { %v323_v18 = vsel %vm321_vm2, %v203_v62, -inf }
 0x198   :  { %v243_v0 = vpop.f32.mrf.mxu2 }
 0x19a   :  { %v205_v3 = vpop.f32.mrf.mxu0  ;;  %v298_v4 = vpop.f32.mrf.mxu1 }
 0x19b   :  { %v330_v9 = vsel %vm321_vm2, %v298_v4, -inf }
 0x19c   :  { %v331_v21 = vmax.f32 %v324_v17, %v330_v9 }
 0x1a0   :  { %v317_v6 = vpop.f32.mrf.mxu2 }
 0x1a1   :  { %v332_v11 = vsel %vm321_vm2, %v317_v6, -inf }
 0x1a2   :  { %v333_v13 = vmax.f32 %v325_v8, %v332_v11  ;;  %v279_v14 = vpop.f32.mrf.mxu0  ;;  %v300_v15 = vpop.f32.mrf.mxu1 }
 0x1a3   :  { %v328_v19 = vsel %vm321_vm2, %v279_v14, -inf }
 0x1a4   :  { %v329_v22 = vmax.f32 %v323_v18, %v328_v19  ;;  %v335_v23 = vmax.f32 %v331_v21, %v333_v13 }
 0x1a6   :  { %v334_v24 = vmax.f32 %v327_v20, %v329_v22 }
 0x1a8   :  { %v336_v25 = vmax.f32 %v334_v24, %v335_v23  ;;  %v319_v26 = vpop.f32.mrf.mxu2 }
 0x1aa   :  { %v337_v29 = vsub.f32 %v184_v51, %v336_v25  ;;  %v338_v30 = vsub.f32 %v203_v62, %v336_v25  ;;  %v339_v31 = vsub.f32 %v222_v59, %v336_v25  ;;  %v340_v32 = vsub.f32 %v241_v60, %v336_v25  ;;  %v281_v33 = vpop.f32.mrf.mxu0 }
 0x1ab   :  { %v341_v34 = vsub.f32 %v260_v57, %v336_v25  ;;  %v342_v38 = vsub.f32 %v279_v14, %v336_v25  ;;  %v343_v41 = vsub.f32 %v298_v4, %v336_v25  ;;  %v344_v44 = vsub.f32 %v317_v6, %v336_v25  ;;  %v2109_v33 = vld [vmem:[%s2763_s2 + $0x30] sm:$0xff] }
 0x1ac   :  { %v345_v35 = vmul.f32 1.442695, %v337_v29  ;;  %v347_v36 = vmul.f32 1.442695, %v338_v30  ;;  %v349_v37 = vmul.f32 1.442695, %v339_v31 }
 0x1ad   :  { %v351_v39 = vmul.f32 1.442695, %v340_v32  ;;  %v353_v42 = vmul.f32 1.442695, %v341_v34  ;;  %v355_v45 = vmul.f32 1.442695, %v342_v38 }
 0x1ae   :  { %2182 = vpow2.f32 %v345_v35  ;;  %v357_v50 = vmul.f32 1.442695, %v343_v41  ;;  %v359_v53 = vmul.f32 1.442695, %v344_v44  ;;  %v2110_v30 = vld [vmem:[%s2763_s2 + $0x38] sm:$0xff] }
 0x1af   :  { %2184 = vpow2.f32 %v347_v36 }
 0x1b0   :  { %2186 = vpow2.f32 %v349_v37 }
 0x1b1   :  { %2188 = vpow2.f32 %v351_v39 }
 0x1b2   :  { %2190 = vpow2.f32 %v353_v42 }
 0x1b3   :  { %2192 = vpow2.f32 %v355_v45 }
 0x1b4   :  { %v2183_v51 = vpop.eup %2182  ;;  %2194 = vpow2.f32 %v357_v50 }
 0x1b5   :  { %v2185_v52 = vpop.eup %2184  ;;  %v361_v54 = vsel %vm321_vm2, %v2183_v51, 0.0  ;;  %2196 = vpow2.f32 %v359_v53  ;;  %v2106_v53 = vld [vmem:[%s2763_s2 + $0x18] sm:$0xff] }
 0x1b6   :  { %v2187_v55 = vpop.eup %2186  ;;  %v362_v56 = vsel %vm321_vm2, %v2185_v52, 0.0 }
 0x1b7   :  { %v2189_v57 = vpop.eup %2188  ;;  %v363_v58 = vadd.f32 %v362_v56, %v361_v54  ;;  %v364_v59 = vsel %vm321_vm2, %v2187_v55, 0.0  ;;  %v2105_v54 = vld [vmem:[%s2763_s2 + $0x10] sm:$0xff]  ;;  %v2103_v56 = vld [vmem:[%s2763_s2] sm:$0xff] }
 0x1b8   :  { %v2191_v60 = vpop.eup %2190  ;;  %v366_v62 = vsel %vm321_vm2, %v2189_v57, 0.0 }
 0x1b9   :  { %v365_v61 = vadd.f32 %v364_v59, %v363_v58  ;;  %v2193_v63 = vpop.eup %2192  ;;  %v368_v1 = vsel %vm321_vm2, %v2191_v60, 0.0 }
 0x1ba   :  { %v2195_v2 = vpop.eup %2194  ;;  %v370_v4 = vsel %vm321_vm2, %v2193_v63, 0.0 }
 0x1bb   :  { %v367_v0 = vadd.f32 %v366_v62, %v365_v61  ;;  %v2197_v5 = vpop.eup %2196  ;;  %v372_v7 = vsel %vm321_vm2, %v2195_v2, 0.0 }
 0x1bc   :  { %v374_v9 = vsel %vm321_vm2, %v2197_v5, 0.0 }
 0x1bd   :  { %v369_v3 = vadd.f32 %v368_v1, %v367_v0 }
 0x1bf   :  { %v371_v6 = vadd.f32 %v370_v4, %v369_v3 }
 0x1c1   :  { %v373_v8 = vadd.f32 %v372_v7, %v371_v6 }
 0x1c3   :  { %v375_v11 = vadd.f32 %v374_v9, %v373_v8  ;;  %v2472_v9 = vld [vmem:[%s2766_s5] sm:$0xff] }
 0x1c5   :  { %2198 = vrcp.f32 %v375_v11  ;;  %v595_v11 = vperm.slane %v2472_v9, 0 }
 0x1cb   :  { %v2199_v13 = vpop.eup %2198 }
 0x1cc   :  { %v377_v14 = vmul.f32 %v2199_v13, %v2183_v51  ;;  %v378_v15 = vmul.f32 %v2199_v13, %v2185_v52  ;;  %v379_v16 = vmul.f32 %v2199_v13, %v2187_v55  ;;  %v380_v17 = vmul.f32 %v2199_v13, %v2189_v57  ;;  %v2108_v51 = vld [vmem:[%s2763_s2 + $0x28] sm:$0xff]  ;;  %v2107_v52 = vld [vmem:[%s2763_s2 + $0x20] sm:$0xff] }
 0x1cd   :  { %v382_v22 = vmul.f32 %v2199_v13, %v2193_v63  ;;  %v381_v23 = vmul.f32 %v2199_v13, %v2191_v60  ;;  %v383_v24 = vmul.f32 %v2199_v13, %v2195_v2  ;;  %v384_v25 = vmul.f32 %v2199_v13, %v2197_v5  ;;  %v2104_v55 = vld [vmem:[%s2763_s2 + $0x8] sm:$0xff] }
 0x1ce   :  { %v385_v18 = vpack.c.bf16 %v377_v14, %v377_v14  ;;  %v386_v19 = vpack.c.bf16 %v378_v15, %v378_v15  ;;  %v387_v20 = vpack.c.bf16 %v379_v16, %v379_v16  ;;  %v388_v21 = vpack.c.bf16 %v380_v17, %v380_v17 }
 0x1cf   :  { %v390_v26 = vpack.c.bf16 %v382_v22, %v382_v22  ;;  %v389_v27 = vpack.c.bf16 %v381_v23, %v381_v23  ;;  %v391_v28 = vpack.c.bf16 %v383_v24, %v383_v24  ;;  %v392_v29 = vpack.c.bf16 %v384_v25, %v384_v25 }
 0x1d0   :  { %1854 = vmatmul.msk.bf16.vlgmr.msra.gmra.mxu3 %vm321_vm2, %v385_v18  ;;  %1855 = vmatmul.msk.bf16.vlgmr.msrb.gmra.mxu0 %vm321_vm2, %v386_v19 }
 0x1d1   :  { %1856 = vmatmul.msk.bf16.vlgmr.msra.gmra.mxu1 %vm321_vm2, %v387_v20  ;;  %1857 = vmatmul.msk.bf16.vlgmr.msra.gmra.mxu2 %vm321_vm2, %v388_v21  ;;  %v2271_v21 = vmov 32.0  }
 0x1d2   :  { %644 = vmatpush.bf16.msra.mxu3 %v2110_v30  ;;  %2200 = vrcp.f32 %v2271_v21 }
 0x1d6   :  { %645 = vmatpush.bf16.msra.mxu3 %v2109_v33 }
 0x1d8   :  { %v2201_v22 = vpop.eup %2200 }
 0x1d9   :  { %v667_v23 = vmul.f32 32.0, %v2201_v22  ;;  %vm671_vm5 = vweird.f32 %v2201_v22 }
 0x1da   :  { %646 = vmatpush.bf16.msra.mxu3 %v2108_v51  ;;  %v2117_v51 = vld [vmem:[%s2765_s4 + $0x20] sm:$0xff] }
 0x1db   :  { %v668_v24 = vsub.f32 1.0, %v667_v23 }
 0x1dd   :  { %v669_v25 = vmul.f32 %v2201_v22, %v668_v24 }
 0x1de   :  { %647 = vmatpush.bf16.msra.mxu3 %v2107_v52 }
 0x1e0   :  { %1858 = vmatmul.msk.bf16.vlgmr.msrb.gmra.mxu3 %vm321_vm2, %v389_v27  ;;  %1859 = vmatmul.msk.bf16.vlgmr.msra.gmra.mxu0 %vm321_vm2, %v390_v26  ;;  %v670_v26 = vadd.f32 %v2201_v22, %v669_v25 }
 0x1e1   :  { %1860 = vmatmul.msk.bf16.vlgmr.msrb.gmra.mxu1 %vm321_vm2, %v391_v28  ;;  %1861 = vmatmul.msk.bf16.vlgmr.msrb.gmra.mxu2 %vm321_vm2, %v392_v29 }
 0x1e2   :  { %648 = vmatpush.bf16.msra.mxu3 %v2106_v53  ;;  %v2479_v27 = vsel %vm671_vm5, %v2201_v22, %v670_v26  ;;  %v771_v22 = vperm.slane %v2472_v9, 4 }
 0x1e6   :  { %649 = vmatpush.bf16.msra.mxu3 %v2105_v54 }
 0x1ea   :  { %650 = vmatpush.bf16.msra.mxu3 %v2104_v55 }
 0x1ee   :  { %651 = vmatpush.bf16.msra.mxu3 %v2103_v56 }
 0x24d   :  { %v428_v31 = vpop.f32.mrf.mxu0 }
 0x24e   :  { %v447_v32 = vpop.f32.mrf.mxu1 }
 0x253   :  { %v409_v34 = vpop.f32.mrf.mxu3 }
 0x254   :  { %v466_v35 = vpop.f32.mrf.mxu2 }
 0x255   :  { %v430_v36 = vpop.f32.mrf.mxu0 }
 0x256   :  { %v449_v37 = vpop.f32.mrf.mxu1 }
 0x25b   :  { %v411_v38 = vpop.f32.mrf.mxu3 }
 0x25c   :  { %v468_v39 = vpop.f32.mrf.mxu2 }
 0x25d   :  { %v504_v40 = vpop.f32.mrf.mxu0  ;;  %v2112_v39 = vld [vmem:[%s2764_s3 + $0x8] sm:$0xff] }
 0x25e   :  { %v2151_v41 = vpack.i.bf16 %v504_v40, %v428_v31  ;;  %v523_v42 = vpop.f32.mrf.mxu1  ;;  %744 = vmatpush.bf16.msrb.mxu0 %v2112_v39  ;;  %v2111_v40 = vld [vmem:[%s2764_s3] sm:$0xff] }
 0x25f   :  { %v2156_v43 = vpack.i.bf16 %v523_v42, %v447_v32 }
 0x260   :  { %2152 = vrot.lane.b32.xlu0 %v2151_v41, %s2270_s12  ;;  %v2120_v41 = vld [vmem:[%s2765_s4 + $0x38] sm:$0xff] }
 0x261   :  { %2157 = vrot.lane.b32.xlu1 %v2156_v43, %s2269_s11  ;;  %820 = vmatpush.bf16.msra.mxu1 %v2120_v41 }
 0x262   :  { %745 = vmatpush.bf16.msrb.mxu0 %v2111_v40 }
 0x263   :  { %v485_v44 = vpop.f32.mrf.mxu3 }
 0x264   :  { %v542_v45 = vpop.f32.mrf.mxu2 }
 0x265   :  { %v2161_v46 = vpack.i.bf16 %v542_v45, %v466_v35  ;;  %v506_v47 = vpop.f32.mrf.mxu0 }
 0x266   :  { %v525_v48 = vpop.f32.mrf.mxu1 }
 0x267   :  { %2162 = vrot.lane.b32.xlu2 %v2161_v46, %s2268_s25  ;;  %v2118_v48 = vld [vmem:[%s2765_s4 + $0x28] sm:$0xff] }
 0x26b   :  { %v487_v49 = vpop.f32.mrf.mxu3 }
 0x26c   :  { %v544_v50 = vpop.f32.mrf.mxu2 }
 0x2c1   :  { %v2163_v57 = vpop.permute.xlu2 %2162 }
 0x2c2   :  { %v2165_v0 = vunpack.i.h.bf16 %v2163_v57  ;;  %v2164_v1 = vunpack.i.l.bf16 %v2163_v57 }
 0x2d2   :  { %v2153_v58 = vpop.permute.xlu0 %2152 }
 0x2d3   :  { %v2158_v59 = vpop.permute.xlu1 %2157  ;;  %v2155_v60 = vunpack.i.h.bf16 %v2153_v58  ;;  %v2154_v61 = vunpack.i.l.bf16 %v2153_v58 }
 0x2d4   :  { %v2160_v62 = vunpack.i.h.bf16 %v2158_v59  ;;  %v2159_v63 = vunpack.i.l.bf16 %v2158_v59 }
 0x2d5   :  { %v558_v2 = vsel %vm75_vm0, %v409_v34, %v2154_v61  ;;  %v575_v3 = vsel %vm75_vm0, %v485_v44, %v2155_v60  ;;  %v2119_v44 = vld [vmem:[%s2765_s4 + $0x30] sm:$0xff]  ;;  %v711_v60 = vperm.slane %v2472_v9, 1 }
 0x2d6   :  { %v560_v4 = vsel %vm559_vm3, %v558_v2, %v2159_v63  ;;  %v576_v5 = vsel %vm559_vm3, %v575_v3, %v2160_v62  ;;  %821 = vmatpush.bf16.msra.mxu1 %v2119_v44  ;;  %v2125_v44 = vld [vmem:[%s2762_s1 + $0x50] sm:$0xf0] }
 0x2d7   :  { %v562_v6 = vsel %vm561_vm4, %v560_v4, %v2164_v1  ;;  %v577_v7 = vsel %vm561_vm4, %v576_v5, %v2165_v0  ;;  %v714_v0 = vperm.slane %v2472_v9, 2 }
 0x2d8   :  { %v594_v8 = vpack.c.bf16 %v577_v7, %v562_v6  ;;  %v2116_v7 = vld [vmem:[%s2765_s4 + $0x18] sm:$0xff] }
 0x2da   :  { %652 = vmatmul.bf16.vlgmr.msra.gmra.mxu3 %v594_v8  ;;  %822 = vmatpush.bf16.msra.mxu1 %v2118_v48  ;;  %v2115_v8 = vld [vmem:[%s2765_s4 + $0x10] sm:$0xff] }
 0x2db   :  { %v1946_v48 = vld [vmem:[%s2762_s1 + $0x30] sm:$0xf] }
 0x2de   :  { %823 = vmatpush.bf16.msra.mxu1 %v2117_v51  ;;  %v2121_v51 = vld [vmem:[%s2762_s1 + $0x34] sm:$0xf] }
 0x2e2   :  { %824 = vmatpush.bf16.msra.mxu1 %v2116_v7 }
 0x2e6   :  { %825 = vmatpush.bf16.msra.mxu1 %v2115_v8 }
 0x35d   :  { %v653_v13 = vpop.f32.mrf.mxu3 }
 0x35e   :  { %v654_v14 = vadd.f32 %v653_v13, %v595_v11  ;;  %v2113_v13 = vld [vmem:[%s2765_s4] sm:$0xff] }
 0x360   :  { %v658_v15 = vadd.f32 %v654_v14, %v2346_v10 }
 0x362   :  { %v660_v16 = vsel %vm75_vm0, %v658_v15, 0.0 }
 0x363   :  { %661 = vadd.xlane.f32.xlu0 %v660_v16 }
 0x365   :  { %v655_v17 = vpop.f32.mrf.mxu3 }
 0x366   :  { %v656_v18 = vadd.f32 %v655_v17, %v595_v11  ;;  %v2114_v11 = vld [vmem:[%s2765_s4 + $0x8] sm:$0xff] }
 0x367   :  { %826 = vmatpush.bf16.msra.mxu1 %v2114_v11 }
 0x368   :  { %v659_v19 = vadd.f32 %v656_v18, %v2351_v12 }
 0x36a   :  { %v663_v20 = vsel %vm75_vm0, %v659_v19, 0.0 }
 0x36b   :  { %664 = vadd.xlane.f32.xlu1 %v663_v20  ;;  %827 = vmatpush.bf16.msra.mxu1 %v2113_v13 }
 0x3d6   :  { %v662_v10 = vpop.xlane.xlu0 %661 }
 0x3d7   :  { %v673_v28 = vmul.f32 %v2479_v27, %v662_v10 }
 0x3d9   :  { %v675_v29 = vsub.f32 %v658_v15, %v673_v28  ;;  %v722_v15 = vperm.slane %v2472_v9, 3 }
 0x3db   :  { %v677_v30 = vmul.f32 %v675_v29, %v675_v29 }
 0x3dd   :  { %v679_v12 = vsel %vm75_vm0, %v677_v30, 0.0 }
 0x3de   :  { %v665_v31 = vpop.xlane.xlu1 %664  ;;  %680 = vadd.xlane.f32.xlu2 %v679_v12 }
 0x3df   :  { %v674_v32 = vmul.f32 %v2479_v27, %v665_v31 }
 0x3e1   :  { %v676_v33 = vsub.f32 %v659_v19, %v674_v32 }
 0x3e3   :  { %v678_v34 = vmul.f32 %v676_v33, %v676_v33 }
 0x3e5   :  { %v682_v35 = vsel %vm75_vm0, %v678_v34, 0.0 }
 0x3e6   :  { %683 = vadd.xlane.f32.xlu2 %v682_v35 }
 0x451   :  { %v681_v36 = vpop.xlane.xlu2 %680 }
 0x452   :  { %v685_v37 = vmul.f32 %v681_v36, %v2479_v27 }
 0x454   :  { %v687_v38 = vadd.f32 1e-05, %v685_v37 }
 0x456   :  { %2202 = vrsqrt.f32 %v687_v38  ;;  %vm695_vm7 = vweird.f32 %v687_v38 }
 0x459   :  { %v684_v42 = vpop.xlane.xlu2 %683 }
 0x45a   :  { %v686_v43 = vmul.f32 %v684_v42, %v2479_v27 }
 0x45c   :  { %v2203_v45 = vpop.eup %2202  ;;  %v688_v46 = vadd.f32 1e-05, %v686_v43  ;;  %v1958_v43 = vld [vmem:[%s2762_s1 + $0x48] sm:$0xf] }
 0x45d   :  { %v690_v47 = vmul.f32 %v2203_v45, %v687_v38  ;;  %vm696_vm6 = vweird.f32 %v2203_v45 }
 0x45e   :  { %2204 = vrsqrt.f32 %v688_v46  ;;  %vm697_vm8 = vmor %vm695_vm7, %vm696_vm6  ;;  %vm705_vm10 = vweird.f32 %v688_v46 }
 0x45f   :  { %v691_v49 = vmul.f32 %v2203_v45, %v690_v47  ;;  %v1960_v47 = vld [vmem:[%s2762_s1 + $0x54] sm:$0xf0] }
 0x461   :  { %v692_v50 = vmul.f32 0.5, %v691_v49 }
 0x463   :  { %v693_v52 = vsub.f32 1.5, %v692_v50  ;;  %v2122_v50 = vld [vmem:[%s2762_s1 + $0x38] sm:$0xf0] }
 0x464   :  { %v2205_v53 = vpop.eup %2204 }
 0x465   :  { %v694_v54 = vmul.f32 %v2203_v45, %v693_v52  ;;  %v700_v55 = vmul.f32 %v2205_v53, %v688_v46  ;;  %vm706_vm9 = vweird.f32 %v2205_v53  ;;  %v2124_v46 = vld [vmem:[%s2762_s1 + $0x4c] sm:$0xf]  ;;  %v1948_v52 = vld [vmem:[%s2762_s1 + $0x3c] sm:$0xf0] }
 0x466   :  { %vm707_vm11 = vmor %vm705_vm10, %vm706_vm9  ;;  %v1963_v49 = vor.u32 %v2124_v46, %v1960_v47 }
 0x467   :  { %v701_v56 = vmul.f32 %v2205_v53, %v700_v55  ;;  %v698_v57 = vsel %vm697_vm8, %v2203_v45, %v694_v54  ;;  %v1959_v45 = vor.u32 %v2125_v44, %v1958_v43  ;;  %v1951_v54 = vor.u32 %v2121_v51, %v1948_v52  ;;  %v1966_v55 = vld [vmem:[%s2762_s1 + $0x50] sm:$0xf] }
 0x468   :  { %v709_v61 = vmul.f32 %v698_v57, %v675_v29  ;;  %953 = vmatpush.bf16.msra.mxu0 %v1963_v49 }
 0x469   :  { %v702_v58 = vmul.f32 0.5, %v701_v56  ;;  %939 = vmatpush.bf16.msra.mxu2 %v1959_v45  ;;  %v2126_v56 = vld [vmem:[%s2762_s1 + $0x58] sm:$0xf0] }
 0x46a   :  { %v712_v1 = vmul.f32 %v711_v60, %v709_v61 }
 0x46b   :  { %v703_v59 = vsub.f32 1.5, %v702_v58  ;;  %v1967_v58 = vor.u32 %v2126_v56, %v1966_v55 }
 0x46c   :  { %v715_v4 = vadd.f32 %v714_v0, %v712_v1  ;;  %954 = vmatpush.bf16.msra.mxu0 %v1951_v54 }
 0x46d   :  { %v704_v62 = vmul.f32 %v2205_v53, %v703_v59  ;;  %v1954_v59 = vld [vmem:[%s2762_s1 + $0x38] sm:$0xf] }
 0x46f   :  { %v708_v63 = vsel %vm707_vm11, %v2205_v53, %v704_v62  ;;  %v1947_v53 = vor.u32 %v2122_v50, %v1946_v48 }
 0x470   :  { %v710_v2 = vmul.f32 %v708_v63, %v676_v33 }
 0x471   :  { %940 = vmatpush.bf16.msra.mxu2 %v1947_v53 }
 0x472   :  { %v713_v3 = vmul.f32 %v711_v60, %v710_v2  ;;  %v2123_v60 = vld [vmem:[%s2762_s1 + $0x40] sm:$0xf0] }
 0x474   :  { %v716_v5 = vadd.f32 %v714_v0, %v713_v3  ;;  %v1955_v0 = vor.u32 %v2123_v60, %v1954_v59 }
 0x475   :  { %967 = vmatpush.bf16.msrb.mxu2 %v1967_v58 }
 0x476   :  { %v721_v6 = vpack.c.bf16 %v716_v5, %v715_v4 }
 0x478   :  { %1902 = vmatmul.msk.bf16.vlgmr.msrb.gmra.mxu0 %vm75_vm0, %v721_v6 }
 0x479   :  { %968 = vmatpush.bf16.msrb.mxu2 %v1955_v0 }
 0x4f5   :  { %v747_v14 = vpop.f32.mrf.mxu0 }
 0x4f6   :  { %v748_v16 = vadd.f32 %v747_v14, %v722_v15 }
 0x4f8   :  { %v752_v19 = vmax.f32 %v748_v16, 0.0 }
 0x4fd   :  { %v749_v17 = vpop.f32.mrf.mxu0 }
 0x4fe   :  { %v750_v18 = vadd.f32 %v749_v17, %v722_v15  ;;  %v880_v15 = vperm.slane %v2472_v9, 5 }
 0x500   :  { %v753_v20 = vmax.f32 %v750_v18, 0.0 }
 0x502   :  { %v770_v21 = vpack.c.bf16 %v753_v20, %v752_v19  ;;  %v883_v19 = vperm.slane %v2472_v9, 6 }
 0x504   :  { %828 = vmatmul.bf16.vlgmr.msra.gmra.mxu1 %v770_v21 }
 0x581   :  { %v829_v23 = vpop.f32.mrf.mxu1 }
 0x582   :  { %v830_v24 = vadd.f32 %v829_v23, %v771_v22 }
 0x584   :  { %v834_v25 = vadd.f32 %v830_v24, %v715_v4 }
 0x586   :  { %v836_v26 = vsel %vm75_vm0, %v834_v25, 0.0 }
 0x587   :  { %837 = vadd.xlane.f32.xlu0 %v836_v26 }
 0x589   :  { %v831_v10 = vpop.f32.mrf.mxu1 }
 0x58a   :  { %v832_v28 = vadd.f32 %v831_v10, %v771_v22 }
 0x58c   :  { %v835_v29 = vadd.f32 %v832_v28, %v716_v5 }
 0x58e   :  { %v839_v30 = vsel %vm75_vm0, %v835_v29, 0.0 }
 0x58f   :  { %840 = vadd.xlane.f32.xlu1 %v839_v30 }
 0x5fa   :  { %v838_v12 = vpop.xlane.xlu0 %837 }
 0x5fb   :  { %v842_v31 = vmul.f32 %v838_v12, %v2479_v27 }
 0x5fd   :  { %v844_v32 = vsub.f32 %v834_v25, %v842_v31 }
 0x5ff   :  { %v846_v33 = vmul.f32 %v844_v32, %v844_v32 }
 0x601   :  { %v848_v34 = vsel %vm75_vm0, %v846_v33, 0.0 }
 0x602   :  { %v841_v35 = vpop.xlane.xlu1 %840  ;;  %849 = vadd.xlane.f32.xlu2 %v848_v34 }
 0x603   :  { %v843_v36 = vmul.f32 %v841_v35, %v2479_v27 }
 0x605   :  { %v845_v37 = vsub.f32 %v835_v29, %v843_v36 }
 0x607   :  { %v847_v38 = vmul.f32 %v845_v37, %v845_v37 }
 0x609   :  { %v851_v39 = vsel %vm75_vm0, %v847_v38, 0.0 }
 0x60a   :  { %852 = vadd.xlane.f32.xlu0 %v851_v39 }
 0x675   :  { %v850_v40 = vpop.xlane.xlu2 %849 }
 0x676   :  { %v854_v41 = vmul.f32 %v850_v40, %v2479_v27 }
 0x678   :  { %v856_v42 = vadd.f32 1e-05, %v854_v41 }
 0x67a   :  { %2206 = vrsqrt.f32 %v856_v42  ;;  %vm864_vm13 = vweird.f32 %v856_v42 }
 0x67d   :  { %v853_v57 = vpop.xlane.xlu0 %852 }
 0x67e   :  { %v855_v61 = vmul.f32 %v853_v57, %v2479_v27 }
 0x680   :  { %v2207_v62 = vpop.eup %2206  ;;  %v857_v63 = vadd.f32 1e-05, %v855_v61 }
 0x681   :  { %v859_v1 = vmul.f32 %v2207_v62, %v856_v42  ;;  %vm865_vm12 = vweird.f32 %v2207_v62 }
 0x682   :  { %2208 = vrsqrt.f32 %v857_v63  ;;  %vm866_vm14 = vmor %vm864_vm13, %vm865_vm12  ;;  %vm874_vm5 = vweird.f32 %v857_v63 }
 0x683   :  { %v860_v2 = vmul.f32 %v2207_v62, %v859_v1 }
 0x685   :  { %v861_v3 = vmul.f32 0.5, %v860_v2 }
 0x687   :  { %v862_v4 = vsub.f32 1.5, %v861_v3 }
 0x688   :  { %v2209_v5 = vpop.eup %2208 }
 0x689   :  { %v863_v6 = vmul.f32 %v2207_v62, %v862_v4  ;;  %v869_v7 = vmul.f32 %v2209_v5, %v857_v63  ;;  %vm875_vm15 = vweird.f32 %v2209_v5 }
 0x68a   :  { %vm876_vm6 = vmor %vm874_vm5, %vm875_vm15  ;;  %vm1765_vm5 = vcmask 1041409  }
 0x68b   :  { %v870_v8 = vmul.f32 %v2209_v5, %v869_v7  ;;  %v867_v11 = vsel %vm866_vm14, %v2207_v62, %v863_v6 }
 0x68c   :  { %v878_v16 = vmul.f32 %v867_v11, %v844_v32 }
 0x68d   :  { %v871_v13 = vmul.f32 0.5, %v870_v8 }
 0x68e   :  { %v881_v20 = vmul.f32 %v880_v15, %v878_v16 }
 0x68f   :  { %v872_v14 = vsub.f32 1.5, %v871_v13 }
 0x690   :  { %v2568_v23 = vadd.f32 %v883_v19, %v881_v20 }
 0x691   :  { %v873_v17 = vmul.f32 %v2209_v5, %v872_v14 }
 0x693   :  { %v877_v18 = vsel %vm876_vm6, %v2209_v5, %v873_v17  ;;  %vm1789_vm6 = vcmask 74752  }
 0x694   :  { %v879_v21 = vmul.f32 %v877_v18, %v845_v37 }
 0x696   :  { %v882_v22 = vmul.f32 %v880_v15, %v879_v21 }
 0x698   :  { %v2570_v24 = vadd.f32 %v883_v19, %v882_v22 }
 0x69a   :  { %v897_v25 = vpack.c.bf16 %v2570_v24, %v2568_v23 }
 0x69c   :  { %1968 = vmatmul.msk.bf16.vlgmr.msra.gmra.mxu2 %vm75_vm0, %v897_v25  ;;  %1969 = vmatmul.msk.bf16.vlgmr.msra.gmra.mxu0 %vm75_vm0, %v897_v25 }
 0x6ac   :  { %1970 = vmatmul.msk.bf16.vlgmr.msrb.gmra.mxu2 %vm75_vm0, %v897_v25 }
 0x719   :  { %v956_v26 = vpop.f32.mrf.mxu0 }
 0x71a   :  { %v977_v10 = vpack.c.bf16 %v956_v26, %v956_v26 }
 0x71c   :  { %998 = vrot.lane.b32.xlu0 %v977_v10, %s2269_s11  ;;  %996 = vrot.lane.b32.xlu2 %v977_v10, %s2268_s25  ;;  %v1027_v9 = vsel %vm75_vm0, %v977_v10, 0 }
 0x71d   :  { %1000 = vrot.lane.b32.xlu1 %v977_v10, %s2270_s12  ;;  %1036 = vmatpush.bf16.xpose.msrb.mxu3 %v1027_v9 }
 0x71f   :  { %v942_v28 = vpop.f32.mrf.mxu2 }
 0x720   :  { %v975_v30 = vpack.c.bf16 %v942_v28, %v942_v28 }
 0x721   :  { %v958_v29 = vpop.f32.mrf.mxu0 }
 0x722   :  { %v978_v12 = vpack.c.bf16 %v958_v29, %v958_v29 }
 0x724   :  { %984 = vrot.lane.b32.xlu2 %v975_v30, %s2269_s11  ;;  %982 = vrot.lane.b32.xlu0 %v975_v30, %s2268_s25  ;;  %v1103_v31 = vsel %vm75_vm0, %v978_v12, 0 }
 0x725   :  { %986 = vrot.lane.b32.xlu1 %v975_v30, %s2270_s12  ;;  %1971 = vmatmul.msk.bf16.vlgmr.msrb.gmra.mxu3 %vm75_vm0, %v975_v30 }
 0x726   :  { %1112 = vmatpush.bf16.xpose.msra.mxu3 %v1103_v31 }
 0x727   :  { %v944_v32 = vpop.f32.mrf.mxu2 }
 0x728   :  { %v976_v35 = vpack.c.bf16 %v944_v32, %v944_v32 }
 0x72c   :  { %1005 = vrot.lane.b32.xlu2 %v978_v12, %s2269_s11  ;;  %1003 = vrot.lane.b32.xlu0 %v978_v12, %s2268_s25 }
 0x72d   :  { %1007 = vrot.lane.b32.xlu1 %v978_v12, %s2270_s12 }
 0x72f   :  { %v970_v33 = vpop.f32.mrf.mxu2 }
 0x730   :  { %v979_v34 = vpack.c.bf16 %v970_v33, %v970_v33 }
 0x732   :  { %v1250_v36 = vsel %vm396_vm1, %v979_v34, 0 }
 0x733   :  { %1259 = vmatpush.bf16.msrb.mxu3 %v1250_v36 }
 0x734   :  { %991 = vrot.lane.b32.xlu2 %v976_v35, %s2269_s11  ;;  %989 = vrot.lane.b32.xlu0 %v976_v35, %s2268_s25 }
 0x735   :  { %993 = vrot.lane.b32.xlu1 %v976_v35, %s2270_s12  ;;  %1975 = vmatmul.msk.bf16.vlgmr.msra.gmra.mxu3 %vm75_vm0, %v976_v35 }
 0x737   :  { %v972_v37 = vpop.f32.mrf.mxu2 }
 0x738   :  { %v980_v38 = vpack.c.bf16 %v972_v37, %v972_v37 }
 0x73a   :  { %v1326_v39 = vsel %vm396_vm1, %v980_v38, 0 }
 0x73b   :  { %1335 = vmatpush.bf16.msra.mxu3 %v1326_v39 }
 0x73c   :  { %1012 = vrot.lane.b32.xlu2 %v979_v34, %s2269_s11  ;;  %1010 = vrot.lane.b32.xlu0 %v979_v34, %s2268_s25 }
 0x73d   :  { %1014 = vrot.lane.b32.xlu1 %v979_v34, %s2270_s12 }
 0x744   :  { %1019 = vrot.lane.b32.xlu2 %v980_v38, %s2269_s11  ;;  %1017 = vrot.lane.b32.xlu0 %v980_v38, %s2268_s25 }
 0x745   :  { %1021 = vrot.lane.b32.xlu1 %v980_v38, %s2270_s12 }
 0x776   :  { %v997_v40 = vpop.permute.xlu2 %996 }
 0x777   :  { %v1046_v41 = vsel %vm75_vm0, %v997_v40, 0 }
 0x778   :  { %1055 = vmatpush.bf16.xpose.msrb.mxu0 %v1046_v41 }
 0x77e   :  { %v985_v42 = vpop.permute.xlu2 %984 }
 0x786   :  { %v1006_v43 = vpop.permute.xlu2 %1005 }
 0x787   :  { %v1141_v48 = vsel %vm75_vm0, %v1006_v43, 0 }
 0x78e   :  { %v999_v44 = vpop.permute.xlu0 %998  ;;  %v992_v45 = vpop.permute.xlu2 %991 }
 0x78f   :  { %v1065_v46 = vsel %vm75_vm0, %v999_v44, 0  ;;  %v1001_v47 = vpop.permute.xlu1 %1000 }
 0x790   :  { %v1084_v49 = vsel %vm75_vm0, %v1001_v47, 0  ;;  %1074 = vmatpush.bf16.xpose.msrb.mxu1 %v1065_v46 }
 0x791   :  { %1093 = vmatpush.bf16.xpose.msra.mxu2 %v1084_v49 }
 0x796   :  { %v983_v50 = vpop.permute.xlu0 %982  ;;  %v1013_v51 = vpop.permute.xlu2 %1012 }
 0x797   :  { %v987_v52 = vpop.permute.xlu1 %986  ;;  %v1288_v53 = vsel %vm396_vm1, %v1013_v51, 0  ;;  %1972 = vmatmul.msk.bf16.vlgmr.msrb.gmra.mxu0 %vm75_vm0, %v983_v50  ;;  %1973 = vmatmul.msk.bf16.vlgmr.msrb.gmra.mxu1 %vm75_vm0, %v985_v42 }
 0x798   :  { %1150 = vmatpush.bf16.xpose.msra.mxu1 %v1141_v48  ;;  %1974 = vmatmul.msk.bf16.vlgmr.msra.gmra.mxu2 %vm75_vm0, %v987_v52 }
 0x79e   :  { %v1004_v54 = vpop.permute.xlu0 %1003  ;;  %v1020_v58 = vpop.permute.xlu2 %1019 }
 0x79f   :  { %v1122_v55 = vsel %vm75_vm0, %v1004_v54, 0  ;;  %v1008_v56 = vpop.permute.xlu1 %1007  ;;  %v1364_v60 = vsel %vm396_vm1, %v1020_v58, 0 }
 0x7a0   :  { %1297 = vmatpush.bf16.msrb.mxu1 %v1288_v53  ;;  %v1160_v57 = vsel %vm75_vm0, %v1008_v56, 0  ;;  %1131 = vmatpush.bf16.xpose.msra.mxu0 %v1122_v55 }
 0x7a1   :  { %1169 = vmatpush.bf16.xpose.msrb.mxu2 %v1160_v57 }
 0x7a6   :  { %v990_v59 = vpop.permute.xlu0 %989 }
 0x7a7   :  { %v994_v61 = vpop.permute.xlu1 %993  ;;  %1976 = vmatmul.msk.bf16.vlgmr.msra.gmra.mxu0 %vm75_vm0, %v990_v59  ;;  %1977 = vmatmul.msk.bf16.vlgmr.msra.gmra.mxu1 %vm75_vm0, %v992_v45 }
 0x7a8   :  { %v1038_v62 = vpop.f32.mrf.mxu3  ;;  %1978 = vmatmul.msk.bf16.vlgmr.msrb.gmra.mxu2 %vm75_vm0, %v994_v61  ;;  %1373 = vmatpush.bf16.msra.mxu1 %v1364_v60 }
 0x7a9   :  { %v1175_v28 = vsel %vm321_vm2, %v1038_v62, -inf }
 0x7ae   :  { %v1011_v63 = vpop.permute.xlu0 %1010 }
 0x7af   :  { %v1269_v0 = vsel %vm396_vm1, %v1011_v63, 0  ;;  %v1015_v1 = vpop.permute.xlu1 %1014 }
 0x7b0   :  { %v1307_v2 = vsel %vm396_vm1, %v1015_v1, 0  ;;  %v1040_v3 = vpop.f32.mrf.mxu3  ;;  %1278 = vmatpush.bf16.msrb.mxu0 %v1269_v0 }
 0x7b1   :  { %1316 = vmatpush.bf16.msra.mxu2 %v1307_v2 }
 0x7b6   :  { %v1018_v4 = vpop.permute.xlu0 %1017 }
 0x7b7   :  { %v1345_v5 = vsel %vm396_vm1, %v1018_v4, 0  ;;  %v1022_v6 = vpop.permute.xlu1 %1021 }
 0x7b8   :  { %v1383_v7 = vsel %vm396_vm1, %v1022_v6, 0  ;;  %v1114_v8 = vpop.f32.mrf.mxu3  ;;  %1354 = vmatpush.bf16.msra.mxu0 %v1345_v5 }
 0x7b9   :  { %1392 = vmatpush.bf16.msrb.mxu2 %v1383_v7  ;;  %v1179_v22 = vsel %vm321_vm2, %v1114_v8, -inf }
 0x7ba   :  { %v1180_v33 = vmax.f32 %v1175_v28, %v1179_v22 }
 0x7c0   :  { %v1116_v11 = vpop.f32.mrf.mxu3 }
 0x814   :  { %v1057_v13 = vpop.f32.mrf.mxu0  ;;  %v1076_v14 = vpop.f32.mrf.mxu1 }
 0x815   :  { %v1176_v25 = vsel %vm321_vm2, %v1057_v13, -inf  ;;  %v1177_v29 = vsel %vm321_vm2, %v1076_v14, -inf }
 0x81b   :  { %v1095_v15 = vpop.f32.mrf.mxu2 }
 0x81c   :  { %v1059_v16 = vpop.f32.mrf.mxu0  ;;  %v1078_v17 = vpop.f32.mrf.mxu1  ;;  %v1178_v30 = vsel %vm321_vm2, %v1095_v15, -inf }
 0x823   :  { %v1097_v18 = vpop.f32.mrf.mxu2 }
 0x824   :  { %v1133_v19 = vpop.f32.mrf.mxu0  ;;  %v1152_v20 = vpop.f32.mrf.mxu1 }
 0x825   :  { %v1181_v21 = vsel %vm321_vm2, %v1133_v19, -inf  ;;  %v1183_v26 = vsel %vm321_vm2, %v1152_v20, -inf }
 0x826   :  { %v1182_v10 = vmax.f32 %v1176_v25, %v1181_v21  ;;  %v1184_v34 = vmax.f32 %v1177_v29, %v1183_v26 }
 0x828   :  { %v1187_v36 = vmax.f32 %v1180_v33, %v1182_v10 }
 0x82b   :  { %v1171_v9 = vpop.f32.mrf.mxu2 }
 0x82c   :  { %v1185_v12 = vsel %vm321_vm2, %v1171_v9, -inf  ;;  %v1135_v31 = vpop.f32.mrf.mxu0  ;;  %v1154_v32 = vpop.f32.mrf.mxu1 }
 0x82d   :  { %v1186_v35 = vmax.f32 %v1178_v30, %v1185_v12 }
 0x82f   :  { %v1188_v37 = vmax.f32 %v1184_v34, %v1186_v35  ;;  %v2134_v35 = vld [vmem:[%s2763_s2 + $0x78] sm:$0xff] }
 0x831   :  { %v1189_v38 = vmax.f32 %v1187_v36, %v1188_v37 }
 0x833   :  { %v1190_v39 = vsub.f32 %v1038_v62, %v1189_v38  ;;  %v1191_v40 = vsub.f32 %v1057_v13, %v1189_v38  ;;  %v1192_v41 = vsub.f32 %v1076_v14, %v1189_v38  ;;  %v1193_v42 = vsub.f32 %v1095_v15, %v1189_v38  ;;  %v1173_v43 = vpop.f32.mrf.mxu2 }
 0x834   :  { %v1194_v44 = vsub.f32 %v1114_v8, %v1189_v38  ;;  %v1195_v48 = vsub.f32 %v1133_v19, %v1189_v38  ;;  %v1196_v50 = vsub.f32 %v1152_v20, %v1189_v38  ;;  %v1197_v52 = vsub.f32 %v1171_v9, %v1189_v38  ;;  %v2133_v38 = vld [vmem:[%s2763_s2 + $0x70] sm:$0xff] }
 0x835   :  { %v1198_v45 = vmul.f32 1.442695, %v1190_v39  ;;  %v1200_v46 = vmul.f32 1.442695, %v1191_v40  ;;  %v1202_v47 = vmul.f32 1.442695, %v1192_v41 }
 0x836   :  { %v1204_v49 = vmul.f32 1.442695, %v1193_v42  ;;  %v1206_v51 = vmul.f32 1.442695, %v1194_v44  ;;  %v1208_v53 = vmul.f32 1.442695, %v1195_v48 }
 0x837   :  { %2210 = vpow2.f32 %v1198_v45  ;;  %v1210_v54 = vmul.f32 1.442695, %v1196_v50  ;;  %v1212_v57 = vmul.f32 1.442695, %v1197_v52 }
 0x838   :  { %2212 = vpow2.f32 %v1200_v46 }
 0x839   :  { %2214 = vpow2.f32 %v1202_v47 }
 0x83a   :  { %2216 = vpow2.f32 %v1204_v49 }
 0x83b   :  { %2218 = vpow2.f32 %v1206_v51 }
 0x83c   :  { %2220 = vpow2.f32 %v1208_v53 }
 0x83d   :  { %v2211_v55 = vpop.eup %2210  ;;  %2222 = vpow2.f32 %v1210_v54 }
 0x83e   :  { %v2213_v56 = vpop.eup %2212  ;;  %v1214_v58 = vsel %vm321_vm2, %v2211_v55, 0.0  ;;  %2224 = vpow2.f32 %v1212_v57  ;;  %v2131_v57 = vld [vmem:[%s2763_s2 + $0x60] sm:$0xff] }
 0x83f   :  { %v2215_v59 = vpop.eup %2214  ;;  %v1215_v60 = vsel %vm321_vm2, %v2213_v56, 0.0 }
 0x840   :  { %v2217_v61 = vpop.eup %2216  ;;  %v1216_v62 = vadd.f32 %v1215_v60, %v1214_v58  ;;  %v1217_v63 = vsel %vm321_vm2, %v2215_v59, 0.0  ;;  %v2130_v58 = vld [vmem:[%s2763_s2 + $0x58] sm:$0xff]  ;;  %v2128_v60 = vld [vmem:[%s2763_s2 + $0x48] sm:$0xff] }
 0x841   :  { %v2219_v0 = vpop.eup %2218  ;;  %v1219_v2 = vsel %vm321_vm2, %v2217_v61, 0.0 }
 0x842   :  { %v1218_v1 = vadd.f32 %v1217_v63, %v1216_v62  ;;  %v2221_v3 = vpop.eup %2220  ;;  %v1221_v5 = vsel %vm321_vm2, %v2219_v0, 0.0 }
 0x843   :  { %v2223_v6 = vpop.eup %2222  ;;  %v1223_v8 = vsel %vm321_vm2, %v2221_v3, 0.0 }
 0x844   :  { %v1220_v4 = vadd.f32 %v1219_v2, %v1218_v1  ;;  %v2225_v11 = vpop.eup %2224  ;;  %v1225_v14 = vsel %vm321_vm2, %v2223_v6, 0.0 }
 0x845   :  { %v1227_v16 = vsel %vm321_vm2, %v2225_v11, 0.0 }
 0x846   :  { %v1222_v7 = vadd.f32 %v1221_v5, %v1220_v4 }
 0x848   :  { %v1224_v13 = vadd.f32 %v1223_v8, %v1222_v7 }
 0x84a   :  { %v1226_v15 = vadd.f32 %v1225_v14, %v1224_v13 }
 0x84c   :  { %v1228_v17 = vadd.f32 %v1227_v16, %v1226_v15 }
 0x84e   :  { %2226 = vrcp.f32 %v1228_v17  ;;  %v2679_v17 = vld [vmem:[%s2766_s5 + $0x8] sm:$0xff] }
 0x854   :  { %v2227_v18 = vpop.eup %2226 }
 0x855   :  { %v1230_v19 = vmul.f32 %v2227_v18, %v2211_v55  ;;  %v1231_v20 = vmul.f32 %v2227_v18, %v2213_v56  ;;  %v1232_v21 = vmul.f32 %v2227_v18, %v2215_v59  ;;  %v1233_v22 = vmul.f32 %v2227_v18, %v2217_v61  ;;  %v2132_v56 = vld [vmem:[%s2763_s2 + $0x68] sm:$0xff]  ;;  %v2129_v59 = vld [vmem:[%s2763_s2 + $0x50] sm:$0xff]  ;;  %v2127_v61 = vld [vmem:[%s2763_s2 + $0x40] sm:$0xff] }
 0x856   :  { %v1234_v28 = vmul.f32 %v2227_v18, %v2219_v0  ;;  %v1235_v29 = vmul.f32 %v2227_v18, %v2221_v3  ;;  %v1237_v30 = vmul.f32 %v2227_v18, %v2225_v11  ;;  %v1236_v12 = vmul.f32 %v2227_v18, %v2223_v6 }
 0x857   :  { %v1238_v25 = vpack.c.bf16 %v1230_v19, %v1230_v19  ;;  %v1239_v26 = vpack.c.bf16 %v1231_v20, %v1231_v20  ;;  %v1240_v10 = vpack.c.bf16 %v1232_v21, %v1232_v21  ;;  %v1241_v9 = vpack.c.bf16 %v1233_v22, %v1233_v22 }
 0x858   :  { %v1242_v31 = vpack.c.bf16 %v1234_v28, %v1234_v28  ;;  %v1243_v32 = vpack.c.bf16 %v1235_v29, %v1235_v29  ;;  %v1245_v33 = vpack.c.bf16 %v1237_v30, %v1237_v30  ;;  %v1244_v34 = vpack.c.bf16 %v1236_v12, %v1236_v12 }
 0x859   :  { %1979 = vmatmul.msk.bf16.vlgmr.msrb.gmra.mxu3 %vm321_vm2, %v1238_v25  ;;  %1980 = vmatmul.msk.bf16.vlgmr.msrb.gmra.mxu0 %vm321_vm2, %v1239_v26  ;;  %v1446_v18 = vperm.slane %v2679_v17, 0 }
 0x85a   :  { %1981 = vmatmul.msk.bf16.vlgmr.msrb.gmra.mxu1 %vm321_vm2, %v1240_v10  ;;  %1982 = vmatmul.msk.bf16.vlgmr.msra.gmra.mxu2 %vm321_vm2, %v1241_v9 }
 0x85b   :  { %1495 = vmatpush.bf16.msrb.mxu3 %v2134_v35 }
 0x85f   :  { %1496 = vmatpush.bf16.msrb.mxu3 %v2133_v38  ;;  %v2136_v38 = vld [vmem:[%s2764_s3 + $0x18] sm:$0xff] }
 0x860   :  { %1589 = vmatpush.bf16.msrb.mxu0 %v2136_v38 }
 0x863   :  { %1497 = vmatpush.bf16.msrb.mxu3 %v2132_v56 }
 0x867   :  { %1498 = vmatpush.bf16.msrb.mxu3 %v2131_v57 }
 0x869   :  { %1983 = vmatmul.msk.bf16.vlgmr.msra.gmra.mxu3 %vm321_vm2, %v1242_v31  ;;  %1984 = vmatmul.msk.bf16.vlgmr.msra.gmra.mxu0 %vm321_vm2, %v1243_v32 }
 0x86a   :  { %1985 = vmatmul.msk.bf16.vlgmr.msra.gmra.mxu1 %vm321_vm2, %v1244_v34  ;;  %1986 = vmatmul.msk.bf16.vlgmr.msrb.gmra.mxu2 %vm321_vm2, %v1245_v33 }
 0x86b   :  { %1499 = vmatpush.bf16.msrb.mxu3 %v2130_v58 }
 0x86f   :  { %1500 = vmatpush.bf16.msrb.mxu3 %v2129_v59  ;;  %v1555_v59 = vperm.slane %v2679_v17, 1 }
 0x873   :  { %1501 = vmatpush.bf16.msrb.mxu3 %v2128_v60 }
 0x877   :  { %1502 = vmatpush.bf16.msrb.mxu3 %v2127_v61 }
 0x8d6   :  { %v1280_v36 = vpop.f32.mrf.mxu0 }
 0x8d7   :  { %v1299_v37 = vpop.f32.mrf.mxu1 }
 0x8dc   :  { %v1261_v39 = vpop.f32.mrf.mxu3 }
 0x8dd   :  { %v1318_v40 = vpop.f32.mrf.mxu2 }
 0x8de   :  { %v1282_v41 = vpop.f32.mrf.mxu0 }
 0x8df   :  { %v1301_v42 = vpop.f32.mrf.mxu1 }
 0x8e4   :  { %v1263_v43 = vpop.f32.mrf.mxu3 }
 0x8e5   :  { %v1320_v44 = vpop.f32.mrf.mxu2  ;;  %v2143_v43 = vld [vmem:[%s2765_s4 + $0x70] sm:$0xff] }
 0x8e6   :  { %v1356_v45 = vpop.f32.mrf.mxu0 }
 0x8e7   :  { %v2166_v46 = vpack.i.bf16 %v1356_v45, %v1280_v36  ;;  %v1375_v47 = vpop.f32.mrf.mxu1 }
 0x8e8   :  { %v2171_v48 = vpack.i.bf16 %v1375_v47, %v1299_v37  ;;  %v2142_v47 = vld [vmem:[%s2765_s4 + $0x68] sm:$0xff] }
 0x8e9   :  { %2167 = vrot.lane.b32.xlu1 %v2166_v46, %s2270_s12 }
 0x8ea   :  { %2172 = vrot.lane.b32.xlu0 %v2171_v48, %s2269_s11 }
 0x8ec   :  { %v1337_v49 = vpop.f32.mrf.mxu3 }
 0x8ed   :  { %v1394_v50 = vpop.f32.mrf.mxu2 }
 0x8ee   :  { %v2176_v51 = vpack.i.bf16 %v1394_v50, %v1318_v40  ;;  %v1358_v52 = vpop.f32.mrf.mxu0  ;;  %v2144_v40 = vld [vmem:[%s2765_s4 + $0x78] sm:$0xff]  ;;  %v2141_v50 = vld [vmem:[%s2765_s4 + $0x60] sm:$0xff] }
 0x8ef   :  { %v1377_v53 = vpop.f32.mrf.mxu1  ;;  %1666 = vmatpush.bf16.msrb.mxu1 %v2144_v40 }
 0x8f0   :  { %2177 = vrot.lane.b32.xlu2 %v2176_v51, %s2268_s25 }
 0x8f3   :  { %1667 = vmatpush.bf16.msrb.mxu1 %v2143_v43 }
 0x8f4   :  { %v1339_v54 = vpop.f32.mrf.mxu3 }
 0x8f5   :  { %v1396_v55 = vpop.f32.mrf.mxu2 }
 0x8f7   :  { %1668 = vmatpush.bf16.msrb.mxu1 %v2142_v47 }
 0x8fb   :  { %1669 = vmatpush.bf16.msrb.mxu1 %v2141_v50 }
 0x94a   :  { %v2178_v62 = vpop.permute.xlu2 %2177 }
 0x94b   :  { %v2180_v5 = vunpack.i.h.bf16 %v2178_v62  ;;  %v2179_v6 = vunpack.i.l.bf16 %v2178_v62 }
 0x95b   :  { %v2168_v63 = vpop.permute.xlu1 %2167 }
 0x95c   :  { %v2173_v0 = vpop.permute.xlu0 %2172  ;;  %v2170_v1 = vunpack.i.h.bf16 %v2168_v63  ;;  %v2169_v2 = vunpack.i.l.bf16 %v2168_v63  ;;  %v1558_v63 = vperm.slane %v2679_v17, 2 }
 0x95d   :  { %v2175_v3 = vunpack.i.h.bf16 %v2173_v0  ;;  %v2174_v4 = vunpack.i.l.bf16 %v2173_v0 }
 0x95e   :  { %v1410_v7 = vsel %vm75_vm0, %v1261_v39, %v2169_v2  ;;  %v1425_v8 = vsel %vm75_vm0, %v1337_v49, %v2170_v1  ;;  %v2135_v39 = vld [vmem:[%s2764_s3 + $0x10] sm:$0xff] }
 0x95f   :  { %v1411_v11 = vsel %vm559_vm3, %v1410_v7, %v2174_v4  ;;  %v1426_v13 = vsel %vm559_vm3, %v1425_v8, %v2175_v3  ;;  %1590 = vmatpush.bf16.msrb.mxu0 %v2135_v39  ;;  %v2139_v7 = vld [vmem:[%s2765_s4 + $0x50] sm:$0xff]  ;;  %v2138_v8 = vld [vmem:[%s2765_s4 + $0x48] sm:$0xff] }
 0x960   :  { %v1412_v14 = vsel %vm561_vm4, %v1411_v11, %v2179_v6  ;;  %v1427_v15 = vsel %vm561_vm4, %v1426_v13, %v2180_v5  ;;  %v2140_v6 = vld [vmem:[%s2765_s4 + $0x58] sm:$0xff]  ;;  %v2137_v11 = vld [vmem:[%s2765_s4 + $0x40] sm:$0xff] }
 0x961   :  { %v1445_v16 = vpack.c.bf16 %v1427_v15, %v1412_v14  ;;  %1670 = vmatpush.bf16.msrb.mxu1 %v2140_v6  ;;  %v1567_v14 = vperm.slane %v2679_v17, 3 }
 0x963   :  { %1503 = vmatmul.bf16.vlgmr.msrb.gmra.mxu3 %v1445_v16 }
 0x965   :  { %1671 = vmatpush.bf16.msrb.mxu1 %v2139_v7 }
 0x969   :  { %1672 = vmatpush.bf16.msrb.mxu1 %v2138_v8 }
 0x96d   :  { %1673 = vmatpush.bf16.msrb.mxu1 %v2137_v11 }
 0x9e6   :  { %v1504_v19 = vpop.f32.mrf.mxu3 }
 0x9e7   :  { %v1505_v20 = vadd.f32 %v1504_v19, %v1446_v18 }
 0x9e9   :  { %v1509_v21 = vadd.f32 %v1505_v20, %v2568_v23 }
 0x9eb   :  { %v1511_v22 = vsel %vm75_vm0, %v1509_v21, 0.0 }
 0x9ec   :  { %1512 = vadd.xlane.f32.xlu1 %v1511_v22  ;;  %v1617_v22 = vperm.slane %v2679_v17, 4 }
 0x9ee   :  { %v1506_v25 = vpop.f32.mrf.mxu3 }
 0x9ef   :  { %v1507_v26 = vadd.f32 %v1506_v25, %v1446_v18 }
 0x9f1   :  { %v1510_v10 = vadd.f32 %v1507_v26, %v2570_v24 }
 0x9f3   :  { %v1514_v9 = vsel %vm75_vm0, %v1510_v10, 0.0 }
 0x9f4   :  { %1515 = vadd.xlane.f32.xlu0 %v1514_v9 }
 0xa5f   :  { %v1513_v28 = vpop.xlane.xlu1 %1512 }
 0xa60   :  { %v1517_v29 = vmul.f32 %v1513_v28, %v2479_v27 }
 0xa62   :  { %v1519_v30 = vsub.f32 %v1509_v21, %v1517_v29 }
 0xa64   :  { %v1521_v12 = vmul.f32 %v1519_v30, %v1519_v30 }
 0xa66   :  { %v1523_v31 = vsel %vm75_vm0, %v1521_v12, 0.0 }
 0xa67   :  { %v1516_v32 = vpop.xlane.xlu0 %1515  ;;  %1524 = vadd.xlane.f32.xlu2 %v1523_v31 }
 0xa68   :  { %v1518_v23 = vmul.f32 %v1516_v32, %v2479_v27 }
 0xa6a   :  { %v1520_v33 = vsub.f32 %v1510_v10, %v1518_v23 }
 0xa6c   :  { %v1522_v34 = vmul.f32 %v1520_v33, %v1520_v33 }
 0xa6e   :  { %v1526_v35 = vsel %vm75_vm0, %v1522_v34, 0.0 }
 0xa6f   :  { %1527 = vadd.xlane.f32.xlu1 %v1526_v35 }
 0xada   :  { %v1525_v24 = vpop.xlane.xlu2 %1524 }
 0xadb   :  { %v1529_v36 = vmul.f32 %v1525_v24, %v2479_v27 }
 0xadd   :  { %v1531_v37 = vadd.f32 1e-05, %v1529_v36 }
 0xadf   :  { %2228 = vrsqrt.f32 %v1531_v37  ;;  %vm1539_vm2 = vweird.f32 %v1531_v37 }
 0xae2   :  { %v1528_v41 = vpop.xlane.xlu1 %1527 }
 0xae3   :  { %v1530_v42 = vmul.f32 %v1528_v41, %v2479_v27 }
 0xae5   :  { %v2229_v44 = vpop.eup %2228  ;;  %v1532_v45 = vadd.f32 1e-05, %v1530_v42 }
 0xae6   :  { %v1534_v46 = vmul.f32 %v2229_v44, %v1531_v37  ;;  %vm1540_vm1 = vweird.f32 %v2229_v44 }
 0xae7   :  { %2230 = vrsqrt.f32 %v1532_v45  ;;  %vm1541_vm3 = vmor %vm1539_vm2, %vm1540_vm1  ;;  %vm1549_vm7 = vweird.f32 %v1532_v45 }
 0xae8   :  { %v1535_v48 = vmul.f32 %v2229_v44, %v1534_v46 }
 0xaea   :  { %v1536_v49 = vmul.f32 0.5, %v1535_v48 }
 0xaec   :  { %v1537_v51 = vsub.f32 1.5, %v1536_v49  ;;  %v1756_v49 = vld [vmem:[%s2767_s6 + $0x8] sm:$0xff] }
 0xaed   :  { %v2231_v52 = vpop.eup %2230 }
 0xaee   :  { %v1538_v53 = vmul.f32 %v2229_v44, %v1537_v51  ;;  %v1544_v54 = vmul.f32 %v2231_v52, %v1532_v45  ;;  %vm1550_vm4 = vweird.f32 %v2231_v52  ;;  %v1757_v45 = vld [vmem:[%s2767_s6 + $0x10] sm:$0xff] }
 0xaef   :  { %vm1551_vm8 = vmor %vm1549_vm7, %vm1550_vm4 }
 0xaf0   :  { %v1545_v55 = vmul.f32 %v2231_v52, %v1544_v54  ;;  %v1542_v56 = vsel %vm1541_vm3, %v2229_v44, %v1538_v53  ;;  %v1758_v44 = vld [vmem:[%s2767_s6 + $0x18] sm:$0xff] }
 0xaf1   :  { %v1553_v60 = vmul.f32 %v1542_v56, %v1519_v30  ;;  %1781 = vmatpush.msra.mxu2 %v1758_v44  ;;  %v1726_v56 = vperm.slane %v2679_v17, 5 }
 0xaf2   :  { %v1546_v57 = vmul.f32 0.5, %v1545_v55 }
 0xaf3   :  { %v1556_v0 = vmul.f32 %v1555_v59, %v1553_v60  ;;  %1782 = vmatpush.msra.mxu2 %v1757_v45  ;;  %v1729_v60 = vperm.slane %v2679_v17, 6 }
 0xaf4   :  { %v1547_v58 = vsub.f32 1.5, %v1546_v57 }
 0xaf5   :  { %v1559_v3 = vadd.f32 %v1558_v63, %v1556_v0  ;;  %1783 = vmatpush.msra.mxu2 %v1756_v49 }
 0xaf6   :  { %v1548_v61 = vmul.f32 %v2231_v52, %v1547_v58 }
 0xaf8   :  { %v1552_v62 = vsel %vm1551_vm8, %v2231_v52, %v1548_v61 }
 0xaf9   :  { %v1554_v1 = vmul.f32 %v1552_v62, %v1520_v33 }
 0xafb   :  { %v1557_v2 = vmul.f32 %v1555_v59, %v1554_v1  ;;  %v2272_v59 = vmov 8.0  }
 0xafd   :  { %v1560_v4 = vadd.f32 %v1558_v63, %v1557_v2 }
 0xaff   :  { %v1566_v5 = vpack.c.bf16 %v1560_v4, %v1559_v3 }
 0xb01   :  { %2047 = vmatmul.msk.bf16.vlgmr.msrb.gmra.mxu0 %vm75_vm0, %v1566_v5 }
 0xb7e   :  { %v1592_v13 = vpop.f32.mrf.mxu0 }
 0xb7f   :  { %v1593_v15 = vadd.f32 %v1592_v13, %v1567_v14 }
 0xb81   :  { %v1597_v19 = vmax.f32 %v1593_v15, 0.0 }
 0xb86   :  { %v1594_v16 = vpop.f32.mrf.mxu0 }
 0xb87   :  { %v1595_v18 = vadd.f32 %v1594_v16, %v1567_v14 }
 0xb89   :  { %v1598_v20 = vmax.f32 %v1595_v18, 0.0 }
 0xb8b   :  { %v1616_v21 = vpack.c.bf16 %v1598_v20, %v1597_v19 }
 0xb8d   :  { %1674 = vmatmul.bf16.vlgmr.msrb.gmra.mxu1 %v1616_v21 }
 0xc0a   :  { %v1675_v25 = vpop.f32.mrf.mxu1 }
 0xc0b   :  { %v1676_v26 = vadd.f32 %v1675_v25, %v1617_v22 }
 0xc0d   :  { %v1680_v10 = vadd.f32 %v1676_v26, %v1559_v3 }
 0xc0f   :  { %v1682_v9 = vsel %vm75_vm0, %v1680_v10, 0.0 }
 0xc10   :  { %1683 = vadd.xlane.f32.xlu0 %v1682_v9 }
 0xc12   :  { %v1677_v28 = vpop.f32.mrf.mxu1 }
 0xc13   :  { %v1678_v29 = vadd.f32 %v1677_v28, %v1617_v22 }
 0xc15   :  { %v1681_v30 = vadd.f32 %v1678_v29, %v1560_v4 }
 0xc17   :  { %v1685_v12 = vsel %vm75_vm0, %v1681_v30, 0.0 }
 0xc18   :  { %1686 = vadd.xlane.f32.xlu2 %v1685_v12 }
 0xc83   :  { %v1684_v31 = vpop.xlane.xlu0 %1683 }
 0xc84   :  { %v1688_v32 = vmul.f32 %v1684_v31, %v2479_v27 }
 0xc86   :  { %v1690_v23 = vsub.f32 %v1680_v10, %v1688_v32 }
 0xc88   :  { %v1692_v33 = vmul.f32 %v1690_v23, %v1690_v23 }
 0xc8a   :  { %v1694_v34 = vsel %vm75_vm0, %v1692_v33, 0.0 }
 0xc8b   :  { %v1687_v35 = vpop.xlane.xlu2 %1686  ;;  %1695 = vadd.xlane.f32.xlu1 %v1694_v34 }
 0xc8c   :  { %v1689_v24 = vmul.f32 %v1687_v35, %v2479_v27 }
 0xc8e   :  { %v1691_v36 = vsub.f32 %v1681_v30, %v1689_v24 }
 0xc90   :  { %v1693_v37 = vmul.f32 %v1691_v36, %v1691_v36 }
 0xc92   :  { %v1697_v38 = vsel %vm75_vm0, %v1693_v37, 0.0 }
 0xc93   :  { %1698 = vadd.xlane.f32.xlu0 %v1697_v38 }
 0xcfe   :  { %v1696_v39 = vpop.xlane.xlu1 %1695 }
 0xcff   :  { %v1700_v40 = vmul.f32 %v1696_v39, %v2479_v27 }
 0xd01   :  { %v1702_v41 = vadd.f32 1e-05, %v1700_v40 }
 0xd03   :  { %2232 = vrsqrt.f32 %v1702_v41  ;;  %vm1710_vm10 = vweird.f32 %v1702_v41 }
 0xd06   :  { %v1699_v42 = vpop.xlane.xlu0 %1698 }
 0xd07   :  { %v1701_v43 = vmul.f32 %v1699_v42, %v2479_v27  ;;  %v1755_v27 = vld [vmem:[%s2767_s6] sm:$0xff] }
 0xd08   :  { %1784 = vmatpush.msra.mxu2 %v1755_v27 }
 0xd09   :  { %v2233_v46 = vpop.eup %2232  ;;  %v1703_v47 = vadd.f32 1e-05, %v1701_v43 }
 0xd0a   :  { %v1705_v48 = vmul.f32 %v2233_v46, %v1702_v41  ;;  %vm1711_vm9 = vweird.f32 %v2233_v46 }
 0xd0b   :  { %2234 = vrsqrt.f32 %v1703_v47  ;;  %vm1712_vm11 = vmor %vm1710_vm10, %vm1711_vm9  ;;  %vm1720_vm13 = vweird.f32 %v1703_v47 }
 0xd0c   :  { %v1706_v50 = vmul.f32 %v2233_v46, %v1705_v48  ;;  %2236 = vrcp.f32 %v2272_v59 }
 0xd0e   :  { %v1707_v51 = vmul.f32 0.5, %v1706_v50 }
 0xd10   :  { %v1708_v52 = vsub.f32 1.5, %v1707_v51 }
 0xd11   :  { %v2235_v53 = vpop.eup %2234 }
 0xd12   :  { %v1709_v54 = vmul.f32 %v2233_v46, %v1708_v52  ;;  %v1715_v55 = vmul.f32 %v2235_v53, %v1703_v47  ;;  %vm1721_vm12 = vweird.f32 %v2235_v53  ;;  %v2237_v2 = vpop.eup %2236 }
 0xd13   :  { %vm1722_vm14 = vmor %vm1720_vm13, %vm1721_vm12  ;;  %v1747_v8 = vmul.f32 8.0, %v2237_v2  ;;  %vm1751_vm15 = vweird.f32 %v2237_v2 }
 0xd14   :  { %v1713_v57 = vsel %vm1712_vm11, %v2233_v46, %v1709_v54  ;;  %v1716_v58 = vmul.f32 %v2235_v53, %v1715_v55 }
 0xd15   :  { %v1724_v61 = vmul.f32 %v1713_v57, %v1690_v23  ;;  %v1748_v15 = vsub.f32 1.0, %v1747_v8  ;;  %v2181_v23 = vld [vmem:[%s2768_s7] ss:$0 sm:$0xff] }
 0xd16   :  { %v1717_v62 = vmul.f32 0.5, %v1716_v58 }
 0xd17   :  { %v1727_v63 = vmul.f32 %v1726_v56, %v1724_v61  ;;  %v1749_v20 = vmul.f32 %v2237_v2, %v1748_v15 }
 0xd18   :  { %v1718_v0 = vsub.f32 1.5, %v1717_v62 }
 0xd19   :  { %v1730_v1 = vadd.f32 %v1729_v60, %v1727_v63  ;;  %v1750_v26 = vadd.f32 %v2237_v2, %v1749_v20 }
 0xd1a   :  { %v1719_v3 = vmul.f32 %v2235_v53, %v1718_v0 }
 0xd1b   :  { %v1732_v4 = vsel %vm75_vm0, %v1730_v1, 0.0  ;;  %v1752_v29 = vsel %vm1751_vm15, %v2237_v2, %v1750_v26 }
 0xd1c   :  { %v1733_v5 = vrot.slane %v1732_v4, 4  ;;  %v1723_v6 = vsel %vm1722_vm14, %v2235_v53, %v1719_v3 }
 0xd1d   :  { %v1725_v7 = vmul.f32 %v1723_v6, %v1691_v36 }
 0xd1e   :  { %v1734_v11 = vadd.f32 %v1733_v5, %v1732_v4 }
 0xd1f   :  { %v1728_v13 = vmul.f32 %v1726_v56, %v1725_v7 }
 0xd20   :  { %v1735_v14 = vrot.slane %v1734_v11, 2 }
 0xd21   :  { %v1731_v17 = vadd.f32 %v1729_v60, %v1728_v13 }
 0xd22   :  { %v1736_v19 = vadd.f32 %v1735_v14, %v1734_v11 }
 0xd23   :  { %v1739_v16 = vsel %vm75_vm0, %v1731_v17, 0.0 }
 0xd24   :  { %v1740_v18 = vrot.slane %v1739_v16, 4  ;;  %v1737_v25 = vrot.slane %v1736_v19, 1 }
 0xd26   :  { %v1741_v21 = vadd.f32 %v1740_v18, %v1739_v16  ;;  %v1738_v9 = vadd.f32 %v1737_v25, %v1736_v19 }
 0xd28   :  { %v1742_v22 = vrot.slane %v1741_v21, 2  ;;  %v1753_v12 = vmul.f32 %v1752_v29, %v1738_v9 }
 0xd2a   :  { %v1743_v10 = vadd.f32 %v1742_v22, %v1741_v21 }
 0xd2c   :  { %v1744_v28 = vrot.slane %v1743_v10, 1 }
 0xd2e   :  { %v1745_v30 = vadd.f32 %v1744_v28, %v1743_v10 }
 0xd30   :  { %v1754_v31 = vmul.f32 %v1752_v29, %v1745_v30 }
 0xd32   :  { %v1766_v32 = vsel %vm1765_vm5, %v1754_v31, %v1753_v12 }
 0xd33   :  { %2096 = vmatmul.msk.f32.vlgmr.msra.gmra.mxu2 %vm75_vm0, %v1766_v32 }
 0xdb6   :  { %v1786_v33 = vpop.f32.mrf.mxu2 }
 0xdb7   :  { %v1787_v34 = vadd.f32 %v2181_v23, %v1786_v33 }
 0xdb9   :  { %v1790_v35 = vsel %vm1789_vm6, %v1787_v34, -inf }
 0xdba   :  { %1791 = vmax.xlane.f32.xlu2 %v1790_v35 }
 0xe2d   :  { %v1792_v24 = vpop.xlane.xlu2 %1791 }
 0xe2e   :  { %v1793_v36 = vsub.f32 %v1787_v34, %v1792_v24 }
 0xe30   :  { %v1794_v37 = vmul.f32 1.442695, %v1793_v36 }
 0xe32   :  { %2238 = vpow2.f32 %v1794_v37 }
 0xe38   :  { %v2239_v38 = vpop.eup %2238 }
 0xe39   :  { %v1796_v39 = vsel %vm1789_vm6, %v2239_v38, 0.0 }
 0xe3a   :  { %1797 = vadd.xlane.f32.xlu1 %v1796_v39 }
 0xead   :  { %v1798_v40 = vpop.xlane.xlu1 %1797 }
 0xeae   :  { %2240 = vlog2.f32 %v1798_v40 }
 0xeb4   :  { %v2241_v41 = vpop.eup %2240 }
 0xeb5   :  { %v1800_v42 = vmul.f32 0.6931472, %v2241_v41 }
 0xeb7   :  { %v1801_v43 = vsub.f32 %v1793_v36, %v1800_v42 }
 0xeb9   :  { %1802 = vst.msk [vmem:[#allocation2] sm:$0x3] %vm1789_vm6, %v1801_v43 }
 0xeba   :  { %1813 = dma.vmem_to_hbm [thread:$0]  %s1809_s29, 32, %s1811_s9, [#allocation3]  }
 0xebb   :  { %2266 = dma.done.wait [#allocation3], 32  }
 0xebc   :  { %2267 = vsyncadd [#allocation3], 4294967264 }
 0xebd   :  { %1818 = vsyncpa [#allocation3], 1 }

</bundles_post_ra>
